<compile_context>
chip_gen: v7x
topology: tpu7x:2x2x1
jax: 0.10.0
libtpu: 0.0.40
codegen_flags: <defaults>
</compile_context>

<pallas_src>
import functools

import jax
import jax.numpy as jnp
from jax.experimental import pallas as pl
from jax.experimental.pallas import tpu as pltpu


def _round_up(x, m):
    return ((x + m - 1) // m) * m


def _vq_kernel(z_ref, e_ref, esqh_ref, zq_ref, counts_ref, sqerr_ref, *,
               m_valid, needs_mask, cross_dtype):
    """One grid step: a (tm, D) token tile vs. the full resident codebook (K, D).

    Outputs (per-tile partials; the M grid axis is fully parallel):
      zq_ref     : (tm, D)      nearest codebook row per token
      counts_ref : (1, 1, K)    per-tile one-hot usage counts (valid rows only)
      sqerr_ref  : (1, 1, 128)  per-tile sum of (z_q - z)^2, broadcast lane-dense
    """
    i = pl.program_id(0)

    z = z_ref[...]                       # (tm, D) native dtype
    e = e_ref[...]                       # (K, D)  native dtype
    tm = z.shape[0]
    K = e.shape[0]

    # cross = z @ e^T, contracting both operands on their last (e_dim) axis:
    # no in-kernel transpose of the resident codebook.
    if cross_dtype is not None:
        zc, ec = z.astype(cross_dtype), e.astype(cross_dtype)
    else:
        zc, ec = z, e
    cross = jax.lax.dot_general(
        zc, ec, dimension_numbers=(((1,), (1,)), ((), ())),
        preferred_element_type=jnp.float32)                       # (tm, K)

    # argmin_k ||z - e_k||^2 == argmin_k (0.5*||e_k||^2 - z.e_k): the per-token
    # ||z||^2 term and the global factor 2 do not change the argmin, so the
    # distance proxy is one (tm, K) subtraction (the 0.5 is folded in the wrapper).
    d = esqh_ref[...].astype(jnp.float32) - cross                 # (tm, K)

    # First-minimum argmin (matches torch.argmin tie-break), expressed as a
    # one-hot built once in the MXU dtype and reused by both matmuls below.
    code_iota = jax.lax.broadcasted_iota(jnp.int32, (tm, K), 1)
    d_min = jnp.min(d, axis=1, keepdims=True)
    idx_cand = jnp.where(d == d_min, code_iota, K)                # K acts as +inf index
    min_idx = jnp.min(idx_cand, axis=1, keepdims=True)            # (tm, 1)
    onehot = (code_iota == min_idx).astype(e.dtype)               # (tm, K)

    # Gather the nearest codebook rows with an MXU matmul.
    zq = jax.lax.dot_general(
        onehot, e, dimension_numbers=(((1,), (0,)), ((), ())),
        preferred_element_type=jnp.float32)                       # (tm, D)
    zq_ref[...] = zq.astype(zq_ref.dtype)

    diff = zq - z.astype(jnp.float32)                             # (tm, D) f32

    if needs_mask:
        # Valid-row masks so padded tail rows contribute nothing to the stats.
        row_col = jax.lax.broadcasted_iota(jnp.int32, (tm, 1), 0) + i * tm
        valid_col = (row_col < m_valid).astype(jnp.float32)       # (tm, 1)
        row_lane = jax.lax.broadcasted_iota(jnp.int32, (1, tm), 1) + i * tm
        valid_lane = (row_lane < m_valid).astype(e.dtype)         # (1, tm)
        sq = jnp.sum(diff * diff * valid_col)
    else:
        valid_lane = jnp.ones((1, tm), dtype=e.dtype)
        sq = jnp.sum(diff * diff)

    # Per-tile counts via MXU (mask-vector @ one-hot) instead of an XLU column reduce.
    counts = jnp.dot(valid_lane, onehot, preferred_element_type=jnp.float32)  # (1, K)
    counts_ref[...] = counts.reshape(counts_ref.shape)

    # Lane-dense 128-wide store (avoids a 1-lane masked store for the scalar).
    sqerr_ref[...] = jnp.broadcast_to(sq.astype(jnp.float32), sqerr_ref.shape)


def _vq_pallas(z_flat, embedding, *, tm=None, cross_dtype=None):
    M, D = z_flat.shape
    K, D2 = embedding.shape
    assert D == D2

    itm_z = jnp.dtype(z_flat.dtype).itemsize
    itm_e = jnp.dtype(embedding.dtype).itemsize

    # Generation-aware VMEM budget: request at most ~85% of physical VMEM
    # (64 MiB on v7x, 128 MiB on v5e/v6e) so the compiler keeps scratch headroom.
    try:
        vmem_cap = int(pltpu.get_tpu_info().vmem_capacity_bytes)
    except Exception:
        vmem_cap = 64 * 1024 * 1024      # conservative (v7x-sized) fallback
    budget = int(0.85 * vmem_cap)

    # Fixed (tm-independent) residents: single-buffered codebook + ||e||^2/2 tile
    # + small per-tile stat output buffers.
    fixed = (K * D * itm_e                          # codebook, Buffered(1)
             + _round_up(K, 128) * 4 * 8            # (1, K) e_sq tile, sublane-padded
             + 4 * (K + 128) * 4)                   # counts / sqerr output buffers
    # Per-token-row cost: double-buffered z-in / zq-out tiles + ~6 live (row, K)
    # f32 temporaries (cross, d, iota, idx_cand, one-hot, compare mask).
    per_row = 4 * D * itm_z + 6 * K * 4

    if tm is None:
        # Largest tile the budget allows (fills the MXU, amortizes the ~0.35us/step
        # grid overhead), multiples of 256, clamped to [256, 2048], and not (much)
        # larger than the actual token count.
        tm_fit = (budget - fixed) // max(per_row, 1)
        tm = max(256, min(2048, (tm_fit // 256) * 256))
        tm = min(tm, _round_up(M, 256))
    assert tm % 8 == 0, "token tile must be a multiple of 8 sublanes"

    Mp = _round_up(M, tm)
    if Mp != M:
        z_flat = jnp.pad(z_flat, ((0, Mp - M), (0, 0)))
    grid_m = Mp // tm
    needs_mask = Mp != M

    # Hoist 0.5*||e||^2 out of the grid loop (resident (1, K) input, Buffered(1)).
    e_sq_half = 0.5 * jnp.sum(embedding.astype(jnp.float32) ** 2, axis=1).reshape(1, K)

    footprint = fixed + tm * per_row
    vmem_limit = int(min(budget, max(32 * 1024 * 1024, int(1.4 * footprint))))
    # TODO(synk): if `fixed + 256*per_row` ever exceeds `budget` (very large K on
    # v7x), switch to a K-streaming kernel with an online running argmin.

    out_shapes = (
        jax.ShapeDtypeStruct((Mp, D), z_flat.dtype),          # z_q (padded rows)
        jax.ShapeDtypeStruct((grid_m, 1, K), jnp.float32),    # per-tile counts
        jax.ShapeDtypeStruct((grid_m, 1, 128), jnp.float32),  # per-tile sq error (lane-dense)
    )
    kernel = functools.partial(_vq_kernel, m_valid=M, needs_mask=needs_mask,
                               cross_dtype=cross_dtype)

    zq_pad, counts_p, sqerr_p = pl.pallas_call(
        kernel,
        out_shape=out_shapes,
        grid_spec=pltpu.PrefetchScalarGridSpec(
            num_scalar_prefetch=0,
            grid=(grid_m,),
            in_specs=[
                pl.BlockSpec((tm, D), lambda i: (i, 0)),      # token tile (double-buffered)
                pl.BlockSpec((K, D), lambda i: (0, 0),
                             pipeline_mode=pl.Buffered(1)),   # grid-invariant codebook: 1 buffer
                pl.BlockSpec((1, K), lambda i: (0, 0),
                             pipeline_mode=pl.Buffered(1)),   # grid-invariant 0.5*||e||^2
            ],
            out_specs=[
                pl.BlockSpec((tm, D), lambda i: (i, 0)),
                pl.BlockSpec((1, 1, K), lambda i: (i, 0, 0)),
                pl.BlockSpec((1, 1, 128), lambda i: (i, 0, 0)),
            ],
        ),
        compiler_params=pltpu.CompilerParams(
            dimension_semantics=("parallel",),   # per-tile partials -> megacore-safe
            vmem_limit_bytes=vmem_limit,
        ),
    )(z_flat, embedding, e_sq_half)

    # Wrapper-side reduction of the per-tile partials.
    # Counts are f32: exact per tile (tm <= 2048) and exact overall up to 2^24
    # assignments per code; for larger M accumulate in higher precision here.
    counts = jnp.sum(counts_p, axis=0).reshape(K)
    sqerr = jnp.sum(sqerr_p[:, 0, 0])
    return zq_pad[:M], counts, sqerr


def quantizer_forward(z, embedding, beta, *, tm=None, cross_dtype=None):
    """Mirrors Quantizer.forward.

    z         : (N, e_dim, T)  (PyTorch NCT layout)
    embedding : (n_e, e_dim)
    returns   : (z_q (N, e_dim, T), loss scalar, perplexity scalar)

    cross_dtype: optionally (e.g. jnp.bfloat16 on v5e) run the argmin matmul in a
    lower precision; default None keeps exact f32 argmin semantics.
    """
    N, width, T = z.shape
    n_e, e_dim = embedding.shape
    assert width == e_dim

    # preprocess(): permute(0,2,1) + flatten -> (N*T, e_dim)
    z_flat = jnp.transpose(z, (0, 2, 1)).reshape(-1, e_dim)
    M = z_flat.shape[0]

    zq_flat, counts, sqerr = _vq_pallas(z_flat, embedding, tm=tm,
                                        cross_dtype=cross_dtype)

    # loss = mean((z_q - z.detach())^2) + beta * mean((z_q.detach() - z)^2)
    # forward value is (1 + beta) * mean((z_q - z)^2)
    # TODO(synk): detach()/straight-through only changes gradients, not forward values.
    loss = (1.0 + beta) * sqerr / (M * e_dim)

    # z_q = z + (z_q - z).detach()  -> forward value == z_q; back to (N, e_dim, T)
    z_q = jnp.transpose(zq_flat.reshape(N, T, e_dim), (0, 2, 1))

    # perplexity from mean one-hot usage
    e_mean = counts / M
    perplexity = jnp.exp(-jnp.sum(e_mean * jnp.log(e_mean + 1e-10)))

    return z_q, loss, perplexity


def _reference_forward(z, embedding, beta):
    """Pure-JAX reference for a sanity check (argmin over the mathematically
    equivalent reduced distance, so the check is not sensitive to ULP ties)."""
    N, width, T = z.shape
    n_e, e_dim = embedding.shape
    zf = jnp.transpose(z, (0, 2, 1)).reshape(-1, e_dim)
    d = jnp.sum(embedding ** 2, axis=1) - 2.0 * zf @ embedding.T
    idx = jnp.argmin(d, axis=1)
    zq = embedding[idx]
    loss = (1.0 + beta) * jnp.mean((zq - zf) ** 2)
    zq_out = jnp.transpose(zq.reshape(N, T, e_dim), (0, 2, 1))
    onehot = jax.nn.one_hot(idx, n_e, dtype=zf.dtype)
    e_mean = jnp.mean(onehot, axis=0)
    perplexity = jnp.exp(-jnp.sum(e_mean * jnp.log(e_mean + 1e-10)))
    return zq_out, loss, perplexity


if __name__ == "__main__":
    # Small shapes consistent with the module: width == e_dim
    N, T = 2, 8
    n_e, e_dim = 128, 64
    beta = 0.25

    key = jax.random.PRNGKey(0)
    k_emb, k_z = jax.random.split(key)

    # embedding.weight.data.uniform_(-1/n_e, 1/n_e)
    embedding = jax.random.uniform(
        k_emb, (n_e, e_dim), jnp.float32,
        minval=-1.0 / n_e, maxval=1.0 / n_e)
    z = jax.random.normal(k_z, (N, e_dim, T), dtype=jnp.float32)

    fwd = jax.jit(functools.partial(quantizer_forward, beta=beta))
    z_q, loss, perplexity = fwd(z, embedding)
    jax.block_until_ready((z_q, loss, perplexity))

    # sanity check vs pure-JAX reference
    zq_ref, loss_ref, ppl_ref = _reference_forward(z, embedding, beta)
    assert z_q.shape == (N, e_dim, T)
    assert jnp.allclose(z_q, zq_ref, atol=1e-5, rtol=1e-5)
    assert jnp.allclose(loss, loss_ref, atol=1e-6, rtol=1e-5)
    assert jnp.allclose(perplexity, ppl_ref, atol=1e-4, rtol=1e-4)

    print("KERNEL_OK")
</pallas_src>

<mosaic_0001>
module attributes {stable_mosaic.version = 11 : i64} {
  func.func @_vq_kernel(%arg0: i32, %arg1: memref<256x64xf32, #tpu.memory_space<vmem>>, %arg2: memref<128x64xf32, #tpu.memory_space<vmem>>, %arg3: memref<1x128xf32, #tpu.memory_space<vmem>>, %arg4: memref<256x64xf32, #tpu.memory_space<vmem>>, %arg5: memref<1x1x128xf32, #tpu.memory_space<vmem>>, %arg6: memref<1x1x128xf32, #tpu.memory_space<vmem>>) attributes {dimension_semantics = [#tpu.dimension_semantics<parallel>], iteration_bounds = array<i64: 1>, scalar_prefetch = 0 : i64, scratch_operands = 0 : i64, tpu.core_type = #tpu.core_type<tc>, window_params = [{transform_indices = @transform_0, window_bounds = array<i64: 256, 64>}, {pipeline_mode = #tpu.pipeline_mode<synchronous>, transform_indices = @transform_1, window_bounds = array<i64: 128, 64>}, {pipeline_mode = #tpu.pipeline_mode<synchronous>, transform_indices = @transform_2, window_bounds = array<i64: 1, 128>}, {transform_indices = @transform_3, window_bounds = array<i64: 256, 64>}, {transform_indices = @transform_4, window_bounds = array<i64: 1, 1, 128>}, {transform_indices = @transform_5, window_bounds = array<i64: 1, 1, 128>}]} {
    %c0 = arith.constant 0 : index
    %c0_0 = arith.constant 0 : index
    %0 = vector.load %arg1[%c0, %c0_0] : memref<256x64xf32, #tpu.memory_space<vmem>>, vector<256x64xf32>
    %c0_1 = arith.constant 0 : index
    %c0_2 = arith.constant 0 : index
    %1 = vector.load %arg2[%c0_1, %c0_2] : memref<128x64xf32, #tpu.memory_space<vmem>>, vector<128x64xf32>
    %cst = arith.constant dense<0.000000e+00> : vector<256x128xf32>
    %2 = tpu.matmul %0, %1, %cst {dimension_numbers = #tpu.dot_dimension_numbers<[1], [1], [0], [0], [0, 0, 1, 0], [], []>} : vector<256x64xf32>, vector<128x64xf32>, vector<256x128xf32> -> vector<256x128xf32>
    %c0_3 = arith.constant 0 : index
    %c0_4 = arith.constant 0 : index
    %3 = vector.load %arg3[%c0_3, %c0_4] : memref<1x128xf32, #tpu.memory_space<vmem>>, vector<1x128xf32>
    %4 = vector.broadcast %3 : vector<1x128xf32> to vector<256x128xf32>
    %5 = arith.subf %4, %2 : vector<256x128xf32>
    %6 = tpu.iota {dimensions = array<i32: 1>} : vector<256x128xi32>
    %cst_5 = arith.constant dense<0x7F800000> : vector<256xf32>
    %7 = vector.multi_reduction <minimumf>, %5, %cst_5 [1] : vector<256x128xf32> to vector<256xf32>
    %8 = vector.shape_cast %7 : vector<256xf32> to vector<256x1xf32>
    %9 = vector.broadcast %8 : vector<256x1xf32> to vector<256x128xf32>
    %10 = arith.cmpf oeq, %5, %9 : vector<256x128xf32>
    %c128_i32 = arith.constant 128 : i32
    %11 = vector.broadcast %c128_i32 : i32 to vector<256x128xi32>
    %12 = arith.select %10, %6, %11 : vector<256x128xi1>, vector<256x128xi32>
    %cst_6 = arith.constant dense<2147483647> : vector<256xi32>
    %13 = vector.multi_reduction <minsi>, %12, %cst_6 [1] : vector<256x128xi32> to vector<256xi32>
    %14 = vector.shape_cast %13 : vector<256xi32> to vector<256x1xi32>
    %15 = vector.broadcast %14 : vector<256x1xi32> to vector<256x128xi32>
    %16 = arith.cmpi eq, %6, %15 : vector<256x128xi32>
    %17 = arith.extui %16 : vector<256x128xi1> to vector<256x128xi32>
    %18 = arith.sitofp %17 : vector<256x128xi32> to vector<256x128xf32>
    %cst_7 = arith.constant dense<0.000000e+00> : vector<256x64xf32>
    %19 = tpu.matmul %18, %1, %cst_7 {dimension_numbers = #tpu.dot_dimension_numbers<[1], [0], [0], [1], [0, 0, 1, 1], [], []>} : vector<256x128xf32>, vector<128x64xf32>, vector<256x64xf32> -> vector<256x64xf32>
    %c0_8 = arith.constant 0 : index
    %c0_9 = arith.constant 0 : index
    %20 = vector.load %arg4[%c0_8, %c0_9] : memref<256x64xf32, #tpu.memory_space<vmem>>, vector<256x64xf32>
    tpu.vector_store %arg4[%c0_8, %c0_9], %19 {strides = array<i32>} : memref<256x64xf32, #tpu.memory_space<vmem>>, vector<256x64xf32>,
    %21 = arith.subf %19, %0 : vector<256x64xf32>
    %22 = tpu.iota {dimensions = array<i32: 0>} : vector<256x1xi32>
    %c256_i32 = arith.constant 256 : i32
    %23 = arith.muli %arg0, %c256_i32 : i32
    %24 = vector.broadcast %23 : i32 to vector<256x1xi32>
    %25 = arith.addi %22, %24 : vector<256x1xi32>
    %c16_i32 = arith.constant 16 : i32
    %26 = vector.broadcast %c16_i32 : i32 to vector<256x1xi32>
    %27 = arith.cmpi slt, %25, %26 : vector<256x1xi32>
    %28 = arith.extui %27 : vector<256x1xi1> to vector<256x1xi32>
    %29 = arith.sitofp %28 : vector<256x1xi32> to vector<256x1xf32>
    %30 = tpu.iota {dimensions = array<i32: 1>} : vector<1x256xi32>
    %c256_i32_10 = arith.constant 256 : i32
    %31 = arith.muli %arg0, %c256_i32_10 : i32
    %32 = vector.broadcast %31 : i32 to vector<1x256xi32>
    %33 = arith.addi %30, %32 : vector<1x256xi32>
    %c16_i32_11 = arith.constant 16 : i32
    %34 = vector.broadcast %c16_i32_11 : i32 to vector<1x256xi32>
    %35 = arith.cmpi slt, %33, %34 : vector<1x256xi32>
    %36 = arith.extui %35 : vector<1x256xi1> to vector<1x256xi32>
    %37 = arith.sitofp %36 : vector<1x256xi32> to vector<1x256xf32>
    %38 = arith.mulf %21, %21 : vector<256x64xf32>
    %39 = vector.broadcast %29 : vector<256x1xf32> to vector<256x64xf32>
    %40 = arith.mulf %38, %39 : vector<256x64xf32>
    %41 = vector.shape_cast %40 : vector<256x64xf32> to vector<1x256x64xf32>
    %cst_12 = arith.constant dense<0.000000e+00> : vector<1xf32>
    %42 = vector.multi_reduction <add>, %41, %cst_12 [1, 2] : vector<1x256x64xf32> to vector<1xf32>
    %43 = vector.shape_cast %42 : vector<1xf32> to vector<1x1x1xf32>
    %44 = vector.extract %43[0, 0, 0] : f32 from vector<1x1x1xf32>
    %cst_13 = arith.constant dense<0.000000e+00> : vector<1x128xf32>
    %45 = tpu.matmul %37, %18, %cst_13 {dimension_numbers = #tpu.dot_dimension_numbers<[1], [0], [0], [1], [0, 0, 1, 1], [], []>} : vector<1x256xf32>, vector<256x128xf32>, vector<1x128xf32> -> vector<1x128xf32>
    %46 = vector.shape_cast %45 : vector<1x128xf32> to vector<1x1x128xf32>
    %c0_14 = arith.constant 0 : index
    %c0_15 = arith.constant 0 : index
    %c0_16 = arith.constant 0 : index
    %47 = vector.load %arg5[%c0_14, %c0_15, %c0_16] : memref<1x1x128xf32, #tpu.memory_space<vmem>>, vector<1x1x128xf32>
    tpu.vector_store %arg5[%c0_14, %c0_15, %c0_16], %46 {strides = array<i32>} : memref<1x1x128xf32, #tpu.memory_space<vmem>>, vector<1x1x128xf32>,
    %48 = vector.broadcast %44 : f32 to vector<1x1x128xf32>
    %c0_17 = arith.constant 0 : index
    %c0_18 = arith.constant 0 : index
    %c0_19 = arith.constant 0 : index
    %49 = vector.load %arg6[%c0_17, %c0_18, %c0_19] : memref<1x1x128xf32, #tpu.memory_space<vmem>>, vector<1x1x128xf32>
    tpu.vector_store %arg6[%c0_17, %c0_18, %c0_19], %48 {strides = array<i32>} : memref<1x1x128xf32, #tpu.memory_space<vmem>>, vector<1x1x128xf32>,
    return
  }
  func.func @transform_0(%arg0: i32) -> (i32, i32) {
    %c0_i32 = arith.constant 0 : i32
    %c0_i32_0 = arith.constant 0 : i32
    return %arg0, %c0_i32 : i32, i32
  }
  func.func @transform_1(%arg0: i32) -> (i32, i32) {
    %c0_i32 = arith.constant 0 : i32
    %c0_i32_0 = arith.constant 0 : i32
    %c0_i32_1 = arith.constant 0 : i32
    return %c0_i32, %c0_i32_0 : i32, i32
  }
  func.func @transform_2(%arg0: i32) -> (i32, i32) {
    %c0_i32 = arith.constant 0 : i32
    %c0_i32_0 = arith.constant 0 : i32
    %c0_i32_1 = arith.constant 0 : i32
    return %c0_i32, %c0_i32_0 : i32, i32
  }
  func.func @transform_3(%arg0: i32) -> (i32, i32) {
    %c0_i32 = arith.constant 0 : i32
    %c0_i32_0 = arith.constant 0 : i32
    return %arg0, %c0_i32 : i32, i32
  }
  func.func @transform_4(%arg0: i32) -> (i32, i32, i32) {
    %c0_i32 = arith.constant 0 : i32
    %c0_i32_0 = arith.constant 0 : i32
    %c0_i32_1 = arith.constant 0 : i32
    return %arg0, %c0_i32, %c0_i32_0 : i32, i32, i32
  }
  func.func @transform_5(%arg0: i32) -> (i32, i32, i32) {
    %c0_i32 = arith.constant 0 : i32
    %c0_i32_0 = arith.constant 0 : i32
    %c0_i32_1 = arith.constant 0 : i32
    return %arg0, %c0_i32, %c0_i32_0 : i32, i32, i32
  }
}

</mosaic_0001>

<bundles_post_ra>
// kernel: quantizer_forward.1
= control target key start
LH: loop header
LB: loop body
LE: loop exit
PB: predicated region body
PF: predicated region fallthrough
CT: control target
= control target key end

     0   :  { %vm65_vm0 = vcmask 523264   ;;  %s3695_s1 = inlined_call_operand.vmem [shape: f32[128,64], index: 1, kind: input, shape index: {}]   ;;  %s3696_s0 = inlined_call_operand.vmem [shape: f32[256,64], index: 0, kind: input, shape index: {}]   ;;  %s3697_s2 = inlined_call_operand.vmem [shape: f32[1,128], index: 2, kind: input, shape index: {}]   ;;  %s3698_s3 = inlined_call_operand.vmem [shape: f32[256,64], index: 3, kind: output, shape index: {0}]   ;;  %s3699_s4 = inlined_call_operand.vmem [shape: f32[1,1,128], index: 4, kind: output, shape index: {1}]   ;;  %s3700_s5 = inlined_call_operand.vmem [shape: f32[1,1,128], index: 5, kind: output, shape index: {2}]  }
   0x1   :  { %v49_v0 = vld [vmem:[%s3695_s1] sm:$0xff]  ;;  %v50_v1 = vld [vmem:[%s3695_s1 + $0x8] sm:$0xff]  ;;  %vm2458_vm1 = vmpackc.low %vm65_vm0, %vm65_vm0 }
   0x2   :  { %v2268_v3 = vpack.c.bf16 %v50_v1, %v49_v0  ;;  %v51_v4 = vld [vmem:[%s3695_s1 + $0x10] sm:$0xff]  ;;  %v52_v5 = vld [vmem:[%s3695_s1 + $0x18] sm:$0xff]  ;;  %v53_v7 = vld [vmem:[%s3695_s1 + $0x20] sm:$0xff] }
   0x3   :  { %v2274_v6 = vpack.c.bf16 %v52_v5, %v51_v4  ;;  %v54_v8 = vld [vmem:[%s3695_s1 + $0x28] sm:$0xff]  ;;  %v17_v9 = vld [vmem:[%s3696_s0] sm:$0xff]  ;;  %v55_v11 = vld [vmem:[%s3695_s1 + $0x30] sm:$0xff] }
   0x4   :  { %2270 = vmatprep.subr.msk.bf16.mxu0 %vm2458_vm1, %v2268_v3  ;;  %2317 = vmatprep.subr.bf16.mxu1 %v2268_v3  ;;  %v2280_v10 = vpack.c.bf16 %v54_v8, %v53_v7  ;;  %v56_v12 = vld [vmem:[%s3695_s1 + $0x38] sm:$0xff]  ;;  %v57_v14 = vld [vmem:[%s3695_s1 + $0x40] sm:$0xff]  ;;  %v58_v15 = vld [vmem:[%s3695_s1 + $0x48] sm:$0xff] }
   0x5   :  { %2273 = vmatpush3.bf16.xpose.msk.msra.mxu0 %vm2458_vm1, %v2268_v3  ;;  %2319 = vmatpush3.bf16.msra.mxu1 %v2268_v3  ;;  %v2286_v13 = vpack.c.bf16 %v56_v12, %v55_v11  ;;  %v2292_v16 = vpack.c.bf16 %v58_v15, %v57_v14  ;;  %v59_v17 = vld [vmem:[%s3695_s1 + $0x50] sm:$0xff]  ;;  %v60_v18 = vld [vmem:[%s3695_s1 + $0x58] sm:$0xff]  ;;  %v61_v20 = vld [vmem:[%s3695_s1 + $0x60] sm:$0xff] }
   0x6   :  { %2276 = vmatprep.subr.msk.bf16.mxu0 %vm2458_vm1, %v2274_v6  ;;  %2321 = vmatprep.subr.bf16.mxu1 %v2274_v6  ;;  %v2298_v19 = vpack.c.bf16 %v60_v18, %v59_v17  ;;  %v62_v21 = vld [vmem:[%s3695_s1 + $0x68] sm:$0xff]  ;;  %v63_v23 = vld [vmem:[%s3695_s1 + $0x70] sm:$0xff]  ;;  %v64_v24 = vld [vmem:[%s3695_s1 + $0x78] sm:$0xff] }
   0x7   :  { %2140 = vmatprep.mubr.msk.f32.mxu0 %vm65_vm0, %v17_v9  ;;  %v2304_v22 = vpack.c.bf16 %v62_v21, %v61_v20  ;;  %v2310_v25 = vpack.c.bf16 %v64_v24, %v63_v23  ;;  %v18_v26 = vld [vmem:[%s3696_s0 + $0x8] sm:$0xff]  ;;  %v19_v27 = vld [vmem:[%s3696_s0 + $0x10] sm:$0xff]  ;;  %v20_v28 = vld [vmem:[%s3696_s0 + $0x18] sm:$0xff] }
   0x8   :  { %v21_v29 = vld [vmem:[%s3696_s0 + $0x20] sm:$0xff]  ;;  %v22_v30 = vld [vmem:[%s3696_s0 + $0x28] sm:$0xff]  ;;  %v23_v31 = vld [vmem:[%s3696_s0 + $0x30] sm:$0xff] }
   0x9   :  { %2323 = vmatpush3.bf16.msra.mxu1 %v2274_v6  ;;  %v24_v32 = vld [vmem:[%s3696_s0 + $0x38] sm:$0xff]  ;;  %v25_v33 = vld [vmem:[%s3696_s0 + $0x40] sm:$0xff]  ;;  %v26_v34 = vld [vmem:[%s3696_s0 + $0x48] sm:$0xff] }
   0xa   :  { %2325 = vmatprep.subr.bf16.mxu1 %v2280_v10  ;;  %v27_v35 = vld [vmem:[%s3696_s0 + $0x50] sm:$0xff]  ;;  %v28_v36 = vld [vmem:[%s3696_s0 + $0x58] sm:$0xff]  ;;  %v29_v37 = vld [vmem:[%s3696_s0 + $0x60] sm:$0xff] }
   0xb   :  { %v30_v38 = vld [vmem:[%s3696_s0 + $0x68] sm:$0xff]  ;;  %v31_v39 = vld [vmem:[%s3696_s0 + $0x70] sm:$0xff]  ;;  %v32_v40 = vld [vmem:[%s3696_s0 + $0x78] sm:$0xff] }
   0xc   :  { %v33_v41 = vld [vmem:[%s3696_s0 + $0x80] sm:$0xff]  ;;  %v34_v42 = vld [vmem:[%s3696_s0 + $0x88] sm:$0xff]  ;;  %v35_v43 = vld [vmem:[%s3696_s0 + $0x90] sm:$0xff] }
   0xd   :  { %2279 = vmatpush3.bf16.xpose.msk.msra.mxu0 %vm2458_vm1, %v2274_v6  ;;  %2327 = vmatpush3.bf16.msra.mxu1 %v2280_v10  ;;  %v36_v44 = vld [vmem:[%s3696_s0 + $0x98] sm:$0xff]  ;;  %v37_v45 = vld [vmem:[%s3696_s0 + $0xa0] sm:$0xff]  ;;  %v38_v46 = vld [vmem:[%s3696_s0 + $0xa8] sm:$0xff] }
   0xe   :  { %2282 = vmatprep.subr.msk.bf16.mxu0 %vm2458_vm1, %v2280_v10  ;;  %2329 = vmatprep.subr.bf16.mxu1 %v2286_v13  ;;  %v39_v47 = vld [vmem:[%s3696_s0 + $0xb0] sm:$0xff]  ;;  %v40_v48 = vld [vmem:[%s3696_s0 + $0xb8] sm:$0xff]  ;;  %v41_v49 = vld [vmem:[%s3696_s0 + $0xc0] sm:$0xff] }
   0xf   :  { %v42_v50 = vld [vmem:[%s3696_s0 + $0xc8] sm:$0xff]  ;;  %v43_v51 = vld [vmem:[%s3696_s0 + $0xd0] sm:$0xff]  ;;  %v44_v52 = vld [vmem:[%s3696_s0 + $0xd8] sm:$0xff] }
  0x10   :  { %v45_v53 = vld [vmem:[%s3696_s0 + $0xe0] sm:$0xff]  ;;  %v46_v54 = vld [vmem:[%s3696_s0 + $0xe8] sm:$0xff]  ;;  %v47_v55 = vld [vmem:[%s3696_s0 + $0xf0] sm:$0xff] }
  0x11   :  { %2331 = vmatpush3.bf16.msra.mxu1 %v2286_v13  ;;  %v48_v56 = vld [vmem:[%s3696_s0 + $0xf8] sm:$0xff]  ;;  %v2667_v57 = vld [vmem:[%s3697_s2] ss:$0 sm:$0xff] }
  0x12   :  { %2333 = vmatprep.subr.bf16.mxu1 %v2292_v16 }
  0x15   :  { %2285 = vmatpush3.bf16.xpose.msk.msra.mxu0 %vm2458_vm1, %v2280_v10  ;;  %2335 = vmatpush3.bf16.msra.mxu1 %v2292_v16 }
  0x16   :  { %2288 = vmatprep.subr.msk.bf16.mxu0 %vm2458_vm1, %v2286_v13  ;;  %2337 = vmatprep.subr.bf16.mxu1 %v2298_v19 }
  0x19   :  { %2339 = vmatpush3.bf16.msra.mxu1 %v2298_v19 }
  0x1a   :  { %2341 = vmatprep.subr.bf16.mxu1 %v2304_v22 }
  0x1d   :  { %2291 = vmatpush3.bf16.xpose.msk.msra.mxu0 %vm2458_vm1, %v2286_v13  ;;  %2343 = vmatpush3.bf16.msra.mxu1 %v2304_v22 }
  0x1e   :  { %2294 = vmatprep.subr.msk.bf16.mxu0 %vm2458_vm1, %v2292_v16  ;;  %2345 = vmatprep.subr.bf16.mxu1 %v2310_v25 }
  0x21   :  { %2347 = vmatpush3.bf16.msra.mxu1 %v2310_v25 }
  0x25   :  { %2297 = vmatpush3.bf16.xpose.msk.msra.mxu0 %vm2458_vm1, %v2292_v16 }
  0x26   :  { %2300 = vmatprep.subr.msk.bf16.mxu0 %vm2458_vm1, %v2298_v19 }
  0x2d   :  { %2303 = vmatpush3.bf16.xpose.msk.msra.mxu0 %vm2458_vm1, %v2298_v19 }
  0x2e   :  { %2306 = vmatprep.subr.msk.bf16.mxu0 %vm2458_vm1, %v2304_v22 }
  0x35   :  { %2309 = vmatpush3.bf16.xpose.msk.msra.mxu0 %vm2458_vm1, %v2304_v22 }
  0x36   :  { %2312 = vmatprep.subr.msk.bf16.mxu0 %vm2458_vm1, %v2310_v25 }
  0x3d   :  { %2315 = vmatpush3.bf16.xpose.msk.msra.mxu0 %vm2458_vm1, %v2310_v25 }
  0x44   :  { %2141 = vmatmul.mubr.msk.f32.vlgmr.msra.gmra.mrb[0].mxu0 %vm65_vm0, %v18_v26 }
  0x45   :  { %2143 = vmatprep.mubr.msk.f32.mxu0 %vm65_vm0, %v19_v27 }
  0x48   :  { %2144 = vmatmul.mubr.msk.f32.gmra.mrb[2].mxu0 %vm65_vm0, %v20_v28 }
  0x49   :  { %2146 = vmatprep.mubr.msk.f32.mxu0 %vm65_vm0, %v21_v29 }
  0x4c   :  { %2147 = vmatmul.mubr.msk.f32.gmra.mrb[4].mxu0 %vm65_vm0, %v22_v30 }
  0x4d   :  { %2149 = vmatprep.mubr.msk.f32.mxu0 %vm65_vm0, %v23_v31 }
  0x50   :  { %2150 = vmatmul.mubr.msk.f32.gmra.mrb[6].mxu0 %vm65_vm0, %v24_v32 }
  0x51   :  { %2152 = vmatprep.mubr.msk.f32.mxu0 %vm65_vm0, %v25_v33 }
  0x54   :  { %2153 = vmatmul.mubr.msk.f32.gmra.mrb[8].mxu0 %vm65_vm0, %v26_v34 }
  0x55   :  { %2155 = vmatprep.mubr.msk.f32.mxu0 %vm65_vm0, %v27_v35 }
  0x58   :  { %2156 = vmatmul.mubr.msk.f32.gmra.mrb[10].mxu0 %vm65_vm0, %v28_v36 }
  0x59   :  { %2158 = vmatprep.mubr.msk.f32.mxu0 %vm65_vm0, %v29_v37 }
  0x5c   :  { %2159 = vmatmul.mubr.msk.f32.gmra.mrb[12].mxu0 %vm65_vm0, %v30_v38 }
  0x5d   :  { %2161 = vmatprep.mubr.msk.f32.mxu0 %vm65_vm0, %v31_v39 }
  0x60   :  { %2162 = vmatmul.mubr.msk.f32.gmra.mrb[14].mxu0 %vm65_vm0, %v32_v40 }
  0x61   :  { %2164 = vmatprep.mubr.msk.f32.mxu0 %vm65_vm0, %v33_v41 }
  0x64   :  { %2165 = vmatmul.mubr.msk.f32.gmra.mrb[16].mxu0 %vm65_vm0, %v34_v42 }
  0x65   :  { %2167 = vmatprep.mubr.msk.f32.mxu0 %vm65_vm0, %v35_v43 }
  0x68   :  { %2168 = vmatmul.mubr.msk.f32.gmra.mrb[18].mxu0 %vm65_vm0, %v36_v44 }
  0x69   :  { %2170 = vmatprep.mubr.msk.f32.mxu0 %vm65_vm0, %v37_v45 }
  0x6c   :  { %2171 = vmatmul.mubr.msk.f32.gmra.mrb[20].mxu0 %vm65_vm0, %v38_v46 }
  0x6d   :  { %2173 = vmatprep.mubr.msk.f32.mxu0 %vm65_vm0, %v39_v47 }
  0x70   :  { %2174 = vmatmul.mubr.msk.f32.gmra.mrb[22].mxu0 %vm65_vm0, %v40_v48 }
  0x71   :  { %2176 = vmatprep.mubr.msk.f32.mxu0 %vm65_vm0, %v41_v49 }
  0x74   :  { %2177 = vmatmul.mubr.msk.f32.gmra.mrb[24].mxu0 %vm65_vm0, %v42_v50 }
  0x75   :  { %2179 = vmatprep.mubr.msk.f32.mxu0 %vm65_vm0, %v43_v51 }
  0x78   :  { %2180 = vmatmul.mubr.msk.f32.gmra.mrb[26].mxu0 %vm65_vm0, %v44_v52 }
  0x79   :  { %2182 = vmatprep.mubr.msk.f32.mxu0 %vm65_vm0, %v45_v53 }
  0x7c   :  { %2183 = vmatmul.mubr.msk.f32.gmra.mrb[28].mxu0 %vm65_vm0, %v46_v54 }
  0x7d   :  { %2185 = vmatprep.mubr.msk.f32.mxu0 %vm65_vm0, %v47_v55 }
  0x80   :  { %2186 = vmatmul.mubr.msk.f32.gmra.mrb[30].mxu0 %vm65_vm0, %v48_v56 }
 0x117   :  { %v2142_v58 = vpop.f32.mrb[0].mxu0 }
 0x118   :  { %v276_v59 = vpop.f32.mrb[1].mxu0  ;;  %v2674_v63 = vsub.f32 %v2667_v57, %v2142_v58 }
 0x119   :  { %v2670_v60 = vsub.f32 %v2667_v57, %v276_v59  ;;  %v474_v59 = vlaneseq }
 0x11b   :  { %476 = vmin.xlane.f32.xlu0 %v2670_v60  ;;  %v2145_v61 = vpop.f32.mrb[2].mxu0 }
 0x11c   :  { %v286_v62 = vpop.f32.mrb[3].mxu0  ;;  %v2682_v3 = vsub.f32 %v2667_v57, %v2145_v61  ;;  %v2797_v61 = vand.u32 127, %v474_v59 }
 0x11d   :  { %v2677_v0 = vsub.f32 %v2667_v57, %v286_v62 }
 0x11e   :  { %3715 = vst [vmem:[#allocation2_spill] sm:$0xff] %v2797_v61 }
 0x11f   :  { %478 = vmin.xlane.f32.xlu0 %v2674_v63  ;;  %480 = vmin.xlane.f32.xlu1 %v2677_v0  ;;  %v2148_v1 = vpop.f32.mrb[4].mxu0 }
 0x120   :  { %v296_v2 = vpop.f32.mrb[5].mxu0  ;;  %v2690_v7 = vsub.f32 %v2667_v57, %v2148_v1 }
 0x121   :  { %v2685_v4 = vsub.f32 %v2667_v57, %v296_v2 }
 0x123   :  { %482 = vmin.xlane.f32.xlu1 %v2682_v3  ;;  %484 = vmin.xlane.f32.xlu0 %v2685_v4  ;;  %v2151_v5 = vpop.f32.mrb[6].mxu0 }
 0x124   :  { %v306_v6 = vpop.f32.mrb[7].mxu0  ;;  %v2698_v11 = vsub.f32 %v2667_v57, %v2151_v5 }
 0x125   :  { %v2693_v8 = vsub.f32 %v2667_v57, %v306_v6 }
 0x127   :  { %486 = vmin.xlane.f32.xlu1 %v2690_v7  ;;  %488 = vmin.xlane.f32.xlu0 %v2693_v8  ;;  %v2154_v9 = vpop.f32.mrb[8].mxu0 }
 0x128   :  { %v316_v10 = vpop.f32.mrb[9].mxu0  ;;  %v2706_v15 = vsub.f32 %v2667_v57, %v2154_v9 }
 0x129   :  { %v2701_v12 = vsub.f32 %v2667_v57, %v316_v10 }
 0x12b   :  { %490 = vmin.xlane.f32.xlu1 %v2698_v11  ;;  %492 = vmin.xlane.f32.xlu0 %v2701_v12  ;;  %v2157_v13 = vpop.f32.mrb[10].mxu0 }
 0x12c   :  { %v326_v14 = vpop.f32.mrb[11].mxu0  ;;  %v2714_v19 = vsub.f32 %v2667_v57, %v2157_v13 }
 0x12d   :  { %v2709_v16 = vsub.f32 %v2667_v57, %v326_v14 }
 0x12f   :  { %494 = vmin.xlane.f32.xlu1 %v2706_v15  ;;  %496 = vmin.xlane.f32.xlu0 %v2709_v16  ;;  %v2160_v17 = vpop.f32.mrb[12].mxu0 }
 0x130   :  { %v336_v18 = vpop.f32.mrb[13].mxu0  ;;  %v2722_v23 = vsub.f32 %v2667_v57, %v2160_v17 }
 0x131   :  { %v2717_v20 = vsub.f32 %v2667_v57, %v336_v18 }
 0x133   :  { %498 = vmin.xlane.f32.xlu1 %v2714_v19  ;;  %500 = vmin.xlane.f32.xlu0 %v2717_v20  ;;  %v2163_v21 = vpop.f32.mrb[14].mxu0 }
 0x134   :  { %v346_v22 = vpop.f32.mrb[15].mxu0  ;;  %v2730_v27 = vsub.f32 %v2667_v57, %v2163_v21 }
 0x135   :  { %v2725_v24 = vsub.f32 %v2667_v57, %v346_v22 }
 0x137   :  { %502 = vmin.xlane.f32.xlu1 %v2722_v23  ;;  %504 = vmin.xlane.f32.xlu0 %v2725_v24  ;;  %v2166_v25 = vpop.f32.mrb[16].mxu0 }
 0x138   :  { %v356_v26 = vpop.f32.mrb[17].mxu0  ;;  %v2738_v31 = vsub.f32 %v2667_v57, %v2166_v25 }
 0x139   :  { %v2733_v28 = vsub.f32 %v2667_v57, %v356_v26 }
 0x13b   :  { %506 = vmin.xlane.f32.xlu1 %v2730_v27  ;;  %508 = vmin.xlane.f32.xlu0 %v2733_v28  ;;  %v2169_v29 = vpop.f32.mrb[18].mxu0 }
 0x13c   :  { %v366_v30 = vpop.f32.mrb[19].mxu0  ;;  %v2746_v35 = vsub.f32 %v2667_v57, %v2169_v29 }
 0x13d   :  { %v2741_v32 = vsub.f32 %v2667_v57, %v366_v30 }
 0x13f   :  { %510 = vmin.xlane.f32.xlu1 %v2738_v31  ;;  %512 = vmin.xlane.f32.xlu0 %v2741_v32  ;;  %v2172_v33 = vpop.f32.mrb[20].mxu0 }
 0x140   :  { %v376_v34 = vpop.f32.mrb[21].mxu0  ;;  %v2754_v39 = vsub.f32 %v2667_v57, %v2172_v33 }
 0x141   :  { %v2749_v36 = vsub.f32 %v2667_v57, %v376_v34 }
 0x143   :  { %514 = vmin.xlane.f32.xlu1 %v2746_v35  ;;  %516 = vmin.xlane.f32.xlu0 %v2749_v36  ;;  %v2175_v37 = vpop.f32.mrb[22].mxu0 }
 0x144   :  { %v386_v38 = vpop.f32.mrb[23].mxu0  ;;  %v2762_v43 = vsub.f32 %v2667_v57, %v2175_v37 }
 0x145   :  { %v2757_v40 = vsub.f32 %v2667_v57, %v386_v38 }
 0x147   :  { %518 = vmin.xlane.f32.xlu1 %v2754_v39  ;;  %520 = vmin.xlane.f32.xlu0 %v2757_v40  ;;  %v2178_v41 = vpop.f32.mrb[24].mxu0 }
 0x148   :  { %v396_v42 = vpop.f32.mrb[25].mxu0  ;;  %v2770_v47 = vsub.f32 %v2667_v57, %v2178_v41 }
 0x149   :  { %v2765_v44 = vsub.f32 %v2667_v57, %v396_v42 }
 0x14b   :  { %522 = vmin.xlane.f32.xlu1 %v2762_v43  ;;  %524 = vmin.xlane.f32.xlu0 %v2765_v44  ;;  %v2181_v45 = vpop.f32.mrb[26].mxu0 }
 0x14c   :  { %v406_v46 = vpop.f32.mrb[27].mxu0  ;;  %v2778_v51 = vsub.f32 %v2667_v57, %v2181_v45 }
 0x14d   :  { %v2773_v48 = vsub.f32 %v2667_v57, %v406_v46 }
 0x14f   :  { %526 = vmin.xlane.f32.xlu1 %v2770_v47  ;;  %528 = vmin.xlane.f32.xlu0 %v2773_v48  ;;  %v2184_v49 = vpop.f32.mrb[28].mxu0 }
 0x150   :  { %v416_v50 = vpop.f32.mrb[29].mxu0  ;;  %v2789_v56 = vsub.f32 %v2667_v57, %v2184_v49 }
 0x151   :  { %v2781_v52 = vsub.f32 %v2667_v57, %v416_v50 }
 0x153   :  { %530 = vmin.xlane.f32.xlu1 %v2778_v51  ;;  %532 = vmin.xlane.f32.xlu0 %v2781_v52  ;;  %v2187_v53 = vpop.f32.mrb[30].mxu0 }
 0x154   :  { %v2786_v54 = vsub.f32 %v2667_v57, %v2187_v53  ;;  %v426_v55 = vpop.f32.mrb[31].mxu0 }
 0x155   :  { %v2792_v58 = vsub.f32 %v2667_v57, %v426_v55 }
 0x157   :  { %534 = vmin.xlane.f32.xlu1 %v2789_v56  ;;  %536 = vmin.xlane.f32.xlu0 %v2792_v58 }
 0x15b   :  { %538 = vmin.xlane.f32.xlu1 %v2786_v54 }
 0x1a8   :  { %v477_v62 = vpop.xlane.xlu0 %476 }
 0x1a9   :  { %vm540_vm2 = vcmp.eq.f32.partialorder %v2670_v60, %v477_v62 }
 0x1aa   :  { %v2801_v1 = vsel %vm540_vm2, %v2797_v61, 128 }
 0x1ab   :  { %v605_v2 = vshra.s32 %v2801_v1, 16 }
 0x1ac   :  { %v479_v5 = vpop.xlane.xlu0 %478  ;;  %v481_v57 = vpop.xlane.xlu1 %480 }
 0x1ad   :  { %vm541_vm3 = vcmp.eq.f32.partialorder %v2674_v63, %v479_v5  ;;  %vm542_vm4 = vcmp.eq.f32.partialorder %v2677_v0, %v481_v57  ;;  %v2806_v6 = vcvt.s32.f32 %v605_v2 }
 0x1ae   :  { %v2809_v9 = vsel %vm541_vm3, %v2797_v61, 128  ;;  %v2812_v10 = vsel %vm542_vm4, %v2797_v61, 128 }
 0x1af   :  { %608 = vmin.xlane.f32.xlu0 %v2806_v6  ;;  %v619_v60 = vshra.s32 %v2809_v9, 16  ;;  %v633_v13 = vshra.s32 %v2812_v10, 16 }
 0x1b0   :  { %v483_v14 = vpop.xlane.xlu1 %482  ;;  %v485_v17 = vpop.xlane.xlu0 %484 }
 0x1b1   :  { %vm543_vm5 = vcmp.eq.f32.partialorder %v2682_v3, %v483_v14  ;;  %vm544_vm6 = vcmp.eq.f32.partialorder %v2685_v4, %v485_v17  ;;  %v2819_v63 = vcvt.s32.f32 %v619_v60  ;;  %v2821_v0 = vcvt.s32.f32 %v633_v13 }
 0x1b2   :  { %v2824_v18 = vsel %vm543_vm5, %v2797_v61, 128  ;;  %v2827_v21 = vsel %vm544_vm6, %v2797_v61, 128 }
 0x1b3   :  { %622 = vmin.xlane.f32.xlu1 %v2819_v63  ;;  %636 = vmin.xlane.f32.xlu0 %v2821_v0  ;;  %v647_v22 = vshra.s32 %v2824_v18, 16  ;;  %v661_v3 = vshra.s32 %v2827_v21, 16 }
 0x1b4   :  { %v487_v25 = vpop.xlane.xlu1 %486  ;;  %v489_v4 = vpop.xlane.xlu0 %488 }
 0x1b5   :  { %vm545_vm7 = vcmp.eq.f32.partialorder %v2690_v7, %v487_v25  ;;  %vm546_vm8 = vcmp.eq.f32.partialorder %v2693_v8, %v489_v4  ;;  %v2835_v26 = vcvt.s32.f32 %v647_v22  ;;  %v2837_v29 = vcvt.s32.f32 %v661_v3 }
 0x1b6   :  { %v2840_v30 = vsel %vm545_vm7, %v2797_v61, 128  ;;  %v2843_v33 = vsel %vm546_vm8, %v2797_v61, 128 }
 0x1b7   :  { %650 = vmin.xlane.f32.xlu1 %v2835_v26  ;;  %664 = vmin.xlane.f32.xlu0 %v2837_v29  ;;  %v675_v34 = vshra.s32 %v2840_v30, 16  ;;  %v689_v7 = vshra.s32 %v2843_v33, 16 }
 0x1b8   :  { %v491_v37 = vpop.xlane.xlu1 %490  ;;  %v493_v8 = vpop.xlane.xlu0 %492 }
 0x1b9   :  { %vm547_vm9 = vcmp.eq.f32.partialorder %v2698_v11, %v491_v37  ;;  %vm548_vm10 = vcmp.eq.f32.partialorder %v2701_v12, %v493_v8  ;;  %v2851_v38 = vcvt.s32.f32 %v675_v34  ;;  %v2853_v41 = vcvt.s32.f32 %v689_v7 }
 0x1ba   :  { %v2856_v42 = vsel %vm547_vm9, %v2797_v61, 128  ;;  %v2859_v45 = vsel %vm548_vm10, %v2797_v61, 128 }
 0x1bb   :  { %678 = vmin.xlane.f32.xlu1 %v2851_v38  ;;  %692 = vmin.xlane.f32.xlu0 %v2853_v41  ;;  %v703_v46 = vshra.s32 %v2856_v42, 16  ;;  %v717_v11 = vshra.s32 %v2859_v45, 16 }
 0x1bc   :  { %v495_v49 = vpop.xlane.xlu1 %494  ;;  %v497_v12 = vpop.xlane.xlu0 %496 }
 0x1bd   :  { %vm549_vm11 = vcmp.eq.f32.partialorder %v2706_v15, %v495_v49  ;;  %vm550_vm12 = vcmp.eq.f32.partialorder %v2709_v16, %v497_v12  ;;  %v2867_v50 = vcvt.s32.f32 %v703_v46  ;;  %v2869_v53 = vcvt.s32.f32 %v717_v11 }
 0x1be   :  { %v2872_v55 = vsel %vm549_vm11, %v2797_v61, 128  ;;  %v2875_v59 = vsel %vm550_vm12, %v2797_v61, 128 }
 0x1bf   :  { %706 = vmin.xlane.f32.xlu1 %v2867_v50  ;;  %720 = vmin.xlane.f32.xlu0 %v2869_v53  ;;  %v731_v62 = vshra.s32 %v2872_v55, 16  ;;  %v745_v15 = vshra.s32 %v2875_v59, 16 }
 0x1c0   :  { %v499_v2 = vpop.xlane.xlu1 %498  ;;  %v501_v16 = vpop.xlane.xlu0 %500 }
 0x1c1   :  { %vm551_vm13 = vcmp.eq.f32.partialorder %v2714_v19, %v499_v2  ;;  %vm552_vm14 = vcmp.eq.f32.partialorder %v2717_v20, %v501_v16  ;;  %v2883_v5 = vcvt.s32.f32 %v731_v62  ;;  %v2885_v57 = vcvt.s32.f32 %v745_v15 }
 0x1c2   :  { %v2888_v60 = vsel %vm551_vm13, %v2797_v61, 128  ;;  %v2891_v13 = vsel %vm552_vm14, %v2797_v61, 128 }
 0x1c3   :  { %734 = vmin.xlane.f32.xlu1 %v2883_v5  ;;  %748 = vmin.xlane.f32.xlu0 %v2885_v57  ;;  %v759_v14 = vshra.s32 %v2888_v60, 16  ;;  %v773_v19 = vshra.s32 %v2891_v13, 16 }
 0x1c4   :  { %v503_v17 = vpop.xlane.xlu1 %502  ;;  %v505_v20 = vpop.xlane.xlu0 %504 }
 0x1c5   :  { %vm553_vm15 = vcmp.eq.f32.partialorder %v2722_v23, %v503_v17  ;;  %vm554_vm1 = vcmp.eq.f32.partialorder %v2725_v24, %v505_v20  ;;  %v2899_v22 = vcvt.s32.f32 %v759_v14  ;;  %v2901_v3 = vcvt.s32.f32 %v773_v19 }
 0x1c6   :  { %v2904_v25 = vsel %vm553_vm15, %v2797_v61, 128  ;;  %v2907_v4 = vsel %vm554_vm1, %v2797_v61, 128 }
 0x1c7   :  { %762 = vmin.xlane.f32.xlu1 %v2899_v22  ;;  %776 = vmin.xlane.f32.xlu0 %v2901_v3  ;;  %v787_v34 = vshra.s32 %v2904_v25, 16  ;;  %v801_v23 = vshra.s32 %v2907_v4, 16 }
 0x1c8   :  { %v507_v7 = vpop.xlane.xlu1 %506  ;;  %v509_v24 = vpop.xlane.xlu0 %508 }
 0x1c9   :  { %vm555_vm2 = vcmp.eq.f32.partialorder %v2730_v27, %v507_v7  ;;  %vm556_vm3 = vcmp.eq.f32.partialorder %v2733_v28, %v509_v24  ;;  %v2915_v37 = vcvt.s32.f32 %v787_v34  ;;  %v2917_v8 = vcvt.s32.f32 %v801_v23 }
 0x1ca   :  { %v2920_v46 = vsel %vm555_vm2, %v2797_v61, 128  ;;  %v2923_v11 = vsel %vm556_vm3, %v2797_v61, 128 }
 0x1cb   :  { %790 = vmin.xlane.f32.xlu1 %v2915_v37  ;;  %804 = vmin.xlane.f32.xlu0 %v2917_v8  ;;  %v815_v49 = vshra.s32 %v2920_v46, 16  ;;  %v829_v27 = vshra.s32 %v2923_v11, 16 }
 0x1cc   :  { %v511_v12 = vpop.xlane.xlu1 %510  ;;  %v513_v28 = vpop.xlane.xlu0 %512 }
 0x1cd   :  { %vm557_vm4 = vcmp.eq.f32.partialorder %v2738_v31, %v511_v12  ;;  %vm558_vm5 = vcmp.eq.f32.partialorder %v2741_v32, %v513_v28  ;;  %v2931_v62 = vcvt.s32.f32 %v815_v49  ;;  %v2933_v15 = vcvt.s32.f32 %v829_v27 }
 0x1ce   :  { %v2936_v2 = vsel %vm557_vm4, %v2797_v61, 128  ;;  %v2939_v16 = vsel %vm558_vm5, %v2797_v61, 128 }
 0x1cf   :  { %818 = vmin.xlane.f32.xlu1 %v2931_v62  ;;  %832 = vmin.xlane.f32.xlu0 %v2933_v15  ;;  %v843_v14 = vshra.s32 %v2936_v2, 16  ;;  %v857_v31 = vshra.s32 %v2939_v16, 16 }
 0x1d0   :  { %v515_v19 = vpop.xlane.xlu1 %514  ;;  %v517_v32 = vpop.xlane.xlu0 %516 }
 0x1d1   :  { %vm559_vm6 = vcmp.eq.f32.partialorder %v2746_v35, %v515_v19  ;;  %vm560_vm7 = vcmp.eq.f32.partialorder %v2749_v36, %v517_v32  ;;  %v2947_v17 = vcvt.s32.f32 %v843_v14  ;;  %v2949_v20 = vcvt.s32.f32 %v857_v31 }
 0x1d2   :  { %v2952_v34 = vsel %vm559_vm6, %v2797_v61, 128  ;;  %v2955_v23 = vsel %vm560_vm7, %v2797_v61, 128 }
 0x1d3   :  { %846 = vmin.xlane.f32.xlu1 %v2947_v17  ;;  %860 = vmin.xlane.f32.xlu0 %v2949_v20  ;;  %v871_v7 = vshra.s32 %v2952_v34, 16  ;;  %v885_v35 = vshra.s32 %v2955_v23, 16 }
 0x1d4   :  { %v519_v24 = vpop.xlane.xlu1 %518  ;;  %v521_v36 = vpop.xlane.xlu0 %520 }
 0x1d5   :  { %vm561_vm8 = vcmp.eq.f32.partialorder %v2754_v39, %v519_v24  ;;  %vm562_vm9 = vcmp.eq.f32.partialorder %v2757_v40, %v521_v36  ;;  %v2963_v49 = vcvt.s32.f32 %v871_v7  ;;  %v2965_v27 = vcvt.s32.f32 %v885_v35 }
 0x1d6   :  { %v2968_v12 = vsel %vm561_vm8, %v2797_v61, 128  ;;  %v2971_v28 = vsel %vm562_vm9, %v2797_v61, 128 }
 0x1d7   :  { %874 = vmin.xlane.f32.xlu1 %v2963_v49  ;;  %888 = vmin.xlane.f32.xlu0 %v2965_v27  ;;  %v899_v14 = vshra.s32 %v2968_v12, 16  ;;  %v913_v39 = vshra.s32 %v2971_v28, 16 }
 0x1d8   :  { %v523_v31 = vpop.xlane.xlu1 %522  ;;  %v525_v40 = vpop.xlane.xlu0 %524 }
 0x1d9   :  { %vm563_vm10 = vcmp.eq.f32.partialorder %v2762_v43, %v523_v31  ;;  %vm564_vm11 = vcmp.eq.f32.partialorder %v2765_v44, %v525_v40  ;;  %v2979_v19 = vcvt.s32.f32 %v899_v14  ;;  %v2981_v32 = vcvt.s32.f32 %v913_v39 }
 0x1da   :  { %v2984_v7 = vsel %vm563_vm10, %v2797_v61, 128  ;;  %v2987_v35 = vsel %vm564_vm11, %v2797_v61, 128 }
 0x1db   :  { %3716 = vst [vmem:[#allocation3_spill] sm:$0xff] %v2981_v32  ;;  %902 = vmin.xlane.f32.xlu1 %v2979_v19  ;;  %916 = vmin.xlane.f32.xlu0 %v2981_v32  ;;  %v927_v24 = vshra.s32 %v2984_v7, 16  ;;  %v941_v43 = vshra.s32 %v2987_v35, 16 }
 0x1dc   :  { %v527_v36 = vpop.xlane.xlu1 %526  ;;  %v529_v44 = vpop.xlane.xlu0 %528 }
 0x1dd   :  { %vm565_vm12 = vcmp.eq.f32.partialorder %v2770_v47, %v527_v36  ;;  %vm566_vm13 = vcmp.eq.f32.partialorder %v2773_v48, %v529_v44  ;;  %v2995_v14 = vcvt.s32.f32 %v927_v24  ;;  %v2997_v39 = vcvt.s32.f32 %v941_v43 }
 0x1de   :  { %v3000_v31 = vsel %vm565_vm12, %v2797_v61, 128  ;;  %v3003_v40 = vsel %vm566_vm13, %v2797_v61, 128 }
 0x1df   :  { %3717 = vst [vmem:[#allocation4_spill] sm:$0xff] %v2995_v14  ;;  %3718 = vst [vmem:[#allocation5_spill] sm:$0xff] %v2997_v39  ;;  %930 = vmin.xlane.f32.xlu1 %v2995_v14  ;;  %944 = vmin.xlane.f32.xlu0 %v2997_v39  ;;  %v955_v32 = vshra.s32 %v3000_v31, 16  ;;  %v969_v47 = vshra.s32 %v3003_v40, 16 }
 0x1e0   :  { %v531_v36 = vpop.xlane.xlu1 %530  ;;  %v533_v48 = vpop.xlane.xlu0 %532 }
 0x1e1   :  { %vm567_vm14 = vcmp.eq.f32.partialorder %v2778_v51, %v531_v36  ;;  %vm568_vm15 = vcmp.eq.f32.partialorder %v2781_v52, %v533_v48  ;;  %v3011_v24 = vcvt.s32.f32 %v955_v32  ;;  %v3013_v43 = vcvt.s32.f32 %v969_v47 }
 0x1e2   :  { %v3016_v44 = vsel %vm567_vm14, %v2797_v61, 128  ;;  %v3019_v14 = vsel %vm568_vm15, %v2797_v61, 128 }
 0x1e3   :  { %3719 = vst [vmem:[#allocation6_spill] sm:$0xff] %v3011_v24  ;;  %3720 = vst [vmem:[#allocation7_spill] sm:$0xff] %v3013_v43  ;;  %958 = vmin.xlane.f32.xlu1 %v3011_v24  ;;  %972 = vmin.xlane.f32.xlu0 %v3013_v43  ;;  %v983_v39 = vshra.s32 %v3016_v44, 16  ;;  %v997_v51 = vshra.s32 %v3019_v14, 16 }
 0x1e4   :  { %v535_v36 = vpop.xlane.xlu1 %534  ;;  %v537_v52 = vpop.xlane.xlu0 %536 }
 0x1e5   :  { %vm569_vm1 = vcmp.eq.f32.partialorder %v2789_v56, %v535_v36  ;;  %vm570_vm2 = vcmp.eq.f32.partialorder %v2792_v58, %v537_v52  ;;  %v3027_v32 = vcvt.s32.f32 %v983_v39  ;;  %v3029_v47 = vcvt.s32.f32 %v997_v51 }
 0x1e6   :  { %v3032_v48 = vsel %vm569_vm1, %v2797_v61, 128  ;;  %v3035_v24 = vsel %vm570_vm2, %v2797_v61, 128 }
 0x1e7   :  { %3721 = vst [vmem:[#allocation8_spill] sm:$0xff] %v3027_v32  ;;  %3722 = vst [vmem:[#allocation9_spill] sm:$0xff] %v3029_v47  ;;  %986 = vmin.xlane.f32.xlu1 %v3027_v32  ;;  %1000 = vmin.xlane.f32.xlu0 %v3029_v47  ;;  %v1011_v43 = vshra.s32 %v3032_v48, 16  ;;  %v1025_v56 = vshra.s32 %v3035_v24, 16  ;;  %v604_v32 = vand.u32 65535, %v2801_v1 }
 0x1e8   :  { %v539_v36 = vpop.xlane.xlu1 %538 }
 0x1e9   :  { %vm571_vm3 = vcmp.eq.f32.partialorder %v2786_v54, %v539_v36  ;;  %v3042_v58 = vcvt.s32.f32 %v1011_v43  ;;  %v3044_v39 = vcvt.s32.f32 %v1025_v56  ;;  %v618_v54 = vand.u32 65535, %v2809_v9 }
 0x1ea   :  { %v3047_v51 = vsel %vm571_vm3, %v2797_v61, 128  ;;  %v632_v43 = vand.u32 65535, %v2812_v10  ;;  %v606_v36 = vcvt.s32.f32 %v604_v32 }
 0x1eb   :  { %3723 = vst [vmem:[#allocation10_spill] sm:$0xff] %v3042_v58  ;;  %3724 = vst [vmem:[#allocation11_spill] sm:$0xff] %v3044_v39  ;;  %1014 = vmin.xlane.f32.xlu1 %v3042_v58  ;;  %1028 = vmin.xlane.f32.xlu0 %v3044_v39  ;;  %v1039_v52 = vshra.s32 %v3047_v51, 16  ;;  %v646_v39 = vand.u32 65535, %v2824_v18  ;;  %v620_v1 = vcvt.s32.f32 %v618_v54  ;;  %v688_v18 = vand.u32 65535, %v2843_v33 }
 0x1ec   :  { %v634_v9 = vcvt.s32.f32 %v632_v43  ;;  %v716_v33 = vand.u32 65535, %v2859_v45  ;;  %v744_v45 = vand.u32 65535, %v2875_v59  ;;  %v772_v59 = vand.u32 65535, %v2891_v13 }
 0x1ed   :  { %v3052_v47 = vcvt.s32.f32 %v1039_v52  ;;  %v660_v52 = vand.u32 65535, %v2827_v21  ;;  %v648_v54 = vcvt.s32.f32 %v646_v39  ;;  %v800_v13 = vand.u32 65535, %v2907_v4 }
 0x1ee   :  { %v828_v4 = vand.u32 65535, %v2923_v11  ;;  %v856_v11 = vand.u32 65535, %v2939_v16  ;;  %v884_v16 = vand.u32 65535, %v2955_v23  ;;  %v912_v23 = vand.u32 65535, %v2971_v28 }
 0x1ef   :  { %3725 = vst [vmem:[#allocation12_spill] sm:$0xff] %v3052_v47  ;;  %1042 = vmin.xlane.f32.xlu1 %v3052_v47  ;;  %v662_v43 = vcvt.s32.f32 %v660_v52  ;;  %v690_v52 = vcvt.s32.f32 %v688_v18  ;;  %v940_v28 = vand.u32 65535, %v2987_v35  ;;  %v968_v35 = vand.u32 65535, %v3003_v40 }
 0x1f0   :  { %v996_v40 = vand.u32 65535, %v3019_v14  ;;  %v1024_v14 = vand.u32 65535, %v3035_v24 }
 0x23c   :  { %v3058_v56 = vpop.xlane.xlu0 %608 }
 0x23d   :  { %vm610_vm4 = vcmp.eq.f32.partialorder %v2806_v6, %v3058_v56 }
 0x23e   :  { %v611_v61 = vsel %vm610_vm4, %v606_v36, inf }
 0x23f   :  { %612 = vmin.xlane.f32.xlu0 %v611_v61  ;;  %v674_v61 = vand.u32 65535, %v2840_v30  ;;  %v702_v30 = vand.u32 65535, %v2856_v42  ;;  %v730_v42 = vand.u32 65535, %v2872_v55  ;;  %v758_v55 = vand.u32 65535, %v2888_v60 }
 0x240   :  { %v3064_v58 = vpop.xlane.xlu1 %622  ;;  %v3066_v47 = vpop.xlane.xlu0 %636  ;;  %v786_v60 = vand.u32 65535, %v2904_v25  ;;  %v814_v25 = vand.u32 65535, %v2920_v46  ;;  %v842_v46 = vand.u32 65535, %v2936_v2  ;;  %v870_v2 = vand.u32 65535, %v2952_v34 }
 0x241   :  { %vm624_vm5 = vcmp.eq.f32.partialorder %v2819_v63, %v3064_v58  ;;  %vm638_vm6 = vcmp.eq.f32.partialorder %v2821_v0, %v3066_v47  ;;  %v676_v39 = vcvt.s32.f32 %v674_v61  ;;  %v718_v61 = vcvt.s32.f32 %v716_v33 }
 0x242   :  { %v625_v10 = vsel %vm624_vm5, %v620_v1, inf  ;;  %v639_v6 = vsel %vm638_vm6, %v634_v9, inf  ;;  %v760_v33 = vcvt.s32.f32 %v758_v55  ;;  %v898_v34 = vand.u32 65535, %v2968_v12 }
 0x243   :  { %626 = vmin.xlane.f32.xlu1 %v625_v10  ;;  %640 = vmin.xlane.f32.xlu0 %v639_v6  ;;  %v704_v6 = vcvt.s32.f32 %v702_v30  ;;  %v926_v12 = vand.u32 65535, %v2984_v7  ;;  %v954_v7 = vand.u32 65535, %v3000_v31  ;;  %v982_v31 = vand.u32 65535, %v3016_v44 }
 0x244   :  { %v3074_v21 = vpop.xlane.xlu1 %650  ;;  %v3076_v32 = vpop.xlane.xlu0 %664  ;;  %v1010_v44 = vand.u32 65535, %v3032_v48  ;;  %v1038_v48 = vand.u32 65535, %v3047_v51  ;;  %v3735_v51 = vld [vmem:[#allocation12_spill] sm:$0xff] }
 0x245   :  { %vm652_vm7 = vcmp.eq.f32.partialorder %v2835_v26, %v3074_v21  ;;  %vm666_vm8 = vcmp.eq.f32.partialorder %v2837_v29, %v3076_v32 }
 0x246   :  { %v653_v63 = vsel %vm652_vm7, %v648_v54, inf  ;;  %v667_v0 = vsel %vm666_vm8, %v662_v43, inf  ;;  %v732_v43 = vcvt.s32.f32 %v730_v42  ;;  %v802_v42 = vcvt.s32.f32 %v800_v13 }
 0x247   :  { %654 = vmin.xlane.f32.xlu1 %v653_v63  ;;  %668 = vmin.xlane.f32.xlu0 %v667_v0  ;;  %v746_v63 = vcvt.s32.f32 %v744_v45 }
 0x248   :  { %v3084_v36 = vpop.xlane.xlu1 %678  ;;  %v3086_v1 = vpop.xlane.xlu0 %692 }
 0x249   :  { %vm680_vm9 = vcmp.eq.f32.partialorder %v2851_v38, %v3084_v36  ;;  %vm694_vm10 = vcmp.eq.f32.partialorder %v2853_v41, %v3086_v1 }
 0x24a   :  { %v681_v26 = vsel %vm680_vm9, %v676_v39, inf  ;;  %v695_v29 = vsel %vm694_vm10, %v690_v52, inf  ;;  %v774_v39 = vcvt.s32.f32 %v772_v59  ;;  %v844_v59 = vcvt.s32.f32 %v842_v46 }
 0x24b   :  { %682 = vmin.xlane.f32.xlu1 %v681_v26  ;;  %696 = vmin.xlane.f32.xlu0 %v695_v29  ;;  %v788_v29 = vcvt.s32.f32 %v786_v60  ;;  %v886_v60 = vcvt.s32.f32 %v884_v16 }
 0x24c   :  { %v3094_v9 = vpop.xlane.xlu1 %706  ;;  %v3096_v10 = vpop.xlane.xlu0 %720 }
 0x24d   :  { %vm708_vm11 = vcmp.eq.f32.partialorder %v2867_v50, %v3094_v9  ;;  %vm722_vm12 = vcmp.eq.f32.partialorder %v2869_v53, %v3096_v10 }
 0x24e   :  { %v709_v38 = vsel %vm708_vm11, %v704_v6, inf  ;;  %v723_v41 = vsel %vm722_vm12, %v718_v61, inf  ;;  %v816_v61 = vcvt.s32.f32 %v814_v25 }
 0x24f   :  { %710 = vmin.xlane.f32.xlu1 %v709_v38  ;;  %724 = vmin.xlane.f32.xlu0 %v723_v41  ;;  %v830_v38 = vcvt.s32.f32 %v828_v4 }
 0x250   :  { %v3104_v18 = vpop.xlane.xlu1 %734  ;;  %v3106_v54 = vpop.xlane.xlu0 %748 }
 0x251   :  { %vm736_vm13 = vcmp.eq.f32.partialorder %v2883_v5, %v3104_v18  ;;  %vm750_vm14 = vcmp.eq.f32.partialorder %v2885_v57, %v3106_v54 }
 0x252   :  { %v737_v50 = vsel %vm736_vm13, %v732_v43, inf  ;;  %v751_v53 = vsel %vm750_vm14, %v746_v63, inf  ;;  %v858_v43 = vcvt.s32.f32 %v856_v11 }
 0x253   :  { %738 = vmin.xlane.f32.xlu1 %v737_v50  ;;  %752 = vmin.xlane.f32.xlu0 %v751_v53  ;;  %v872_v53 = vcvt.s32.f32 %v870_v2  ;;  %v3730_v2 = vld [vmem:[#allocation7_spill] sm:$0xff] }
 0x254   :  { %v3114_v0 = vpop.xlane.xlu1 %762  ;;  %v3116_v30 = vpop.xlane.xlu0 %776 }
 0x255   :  { %vm764_vm15 = vcmp.eq.f32.partialorder %v2899_v22, %v3114_v0  ;;  %vm778_vm1 = vcmp.eq.f32.partialorder %v2901_v3, %v3116_v30 }
 0x256   :  { %v765_v5 = vsel %vm764_vm15, %v760_v33, inf  ;;  %v779_v57 = vsel %vm778_vm1, %v774_v39, inf  ;;  %v900_v39 = vcvt.s32.f32 %v898_v34  ;;  %v998_v34 = vcvt.s32.f32 %v996_v40 }
 0x257   :  { %766 = vmin.xlane.f32.xlu1 %v765_v5  ;;  %780 = vmin.xlane.f32.xlu0 %v779_v57  ;;  %v914_v5 = vcvt.s32.f32 %v912_v23  ;;  %v3731_v23 = vld [vmem:[#allocation8_spill] sm:$0xff] }
 0x258   :  { %v3124_v52 = vpop.xlane.xlu1 %790  ;;  %v3126_v26 = vpop.xlane.xlu0 %804 }
 0x259   :  { %vm792_vm2 = vcmp.eq.f32.partialorder %v2915_v37, %v3124_v52  ;;  %vm806_vm3 = vcmp.eq.f32.partialorder %v2917_v8, %v3126_v26 }
 0x25a   :  { %v793_v22 = vsel %vm792_vm2, %v788_v29, inf  ;;  %v807_v3 = vsel %vm806_vm3, %v802_v42, inf  ;;  %v928_v29 = vcvt.s32.f32 %v926_v12  ;;  %v942_v42 = vcvt.s32.f32 %v940_v28 }
 0x25b   :  { %794 = vmin.xlane.f32.xlu1 %v793_v22  ;;  %808 = vmin.xlane.f32.xlu0 %v807_v3  ;;  %v3727_v22 = vld [vmem:[#allocation4_spill] sm:$0xff]  ;;  %v1012_v12 = vcvt.s32.f32 %v1010_v44  ;;  %v1026_v28 = vcvt.s32.f32 %v1024_v14  ;;  %v3736_v14 = vld [vmem:[#allocation2_spill] sm:$0xff] }
 0x25c   :  { %v3134_v45 = vpop.xlane.xlu1 %818  ;;  %v3136_v6 = vpop.xlane.xlu0 %832 }
 0x25d   :  { %vm820_vm4 = vcmp.eq.f32.partialorder %v2931_v62, %v3134_v45  ;;  %vm834_vm5 = vcmp.eq.f32.partialorder %v2933_v15, %v3136_v6 }
 0x25e   :  { %v821_v37 = vsel %vm820_vm4, %v816_v61, inf  ;;  %v835_v8 = vsel %vm834_vm5, %v830_v38, inf  ;;  %v956_v38 = vcvt.s32.f32 %v954_v7  ;;  %v1040_v7 = vcvt.s32.f32 %v1038_v48 }
 0x25f   :  { %822 = vmin.xlane.f32.xlu1 %v821_v37  ;;  %836 = vmin.xlane.f32.xlu0 %v835_v8  ;;  %v970_v37 = vcvt.s32.f32 %v968_v35  ;;  %v3729_v8 = vld [vmem:[#allocation6_spill] sm:$0xff] }
 0x260   :  { %v3144_v41 = vpop.xlane.xlu1 %846  ;;  %v3146_v55 = vpop.xlane.xlu0 %860 }
 0x261   :  { %vm848_vm6 = vcmp.eq.f32.partialorder %v2947_v17, %v3144_v41  ;;  %vm862_vm7 = vcmp.eq.f32.partialorder %v2949_v20, %v3146_v55 }
 0x262   :  { %v849_v62 = vsel %vm848_vm6, %v844_v59, inf  ;;  %v863_v15 = vsel %vm862_vm7, %v858_v43, inf }
 0x263   :  { %850 = vmin.xlane.f32.xlu1 %v849_v62  ;;  %864 = vmin.xlane.f32.xlu0 %v863_v15  ;;  %v984_v15 = vcvt.s32.f32 %v982_v31 }
 0x264   :  { %v3154_v63 = vpop.xlane.xlu1 %874  ;;  %v3156_v50 = vpop.xlane.xlu0 %888 }
 0x265   :  { %vm876_vm8 = vcmp.eq.f32.partialorder %v2963_v49, %v3154_v63  ;;  %vm890_vm9 = vcmp.eq.f32.partialorder %v2965_v27, %v3156_v50  ;;  %v3726_v49 = vld [vmem:[#allocation3_spill] sm:$0xff] }
 0x266   :  { %v877_v17 = vsel %vm876_vm8, %v872_v53, inf  ;;  %v891_v20 = vsel %vm890_vm9, %v886_v60, inf  ;;  %v3732_v53 = vld [vmem:[#allocation9_spill] sm:$0xff] }
 0x267   :  { %878 = vmin.xlane.f32.xlu1 %v877_v17  ;;  %892 = vmin.xlane.f32.xlu0 %v891_v20 }
 0x268   :  { %v3164_v13 = vpop.xlane.xlu1 %902  ;;  %v3166_v33 = vpop.xlane.xlu0 %916 }
 0x269   :  { %vm904_vm10 = vcmp.eq.f32.partialorder %v2979_v19, %v3164_v13  ;;  %vm918_vm11 = vcmp.eq.f32.partialorder %v3726_v49, %v3166_v33  ;;  %v3728_v19 = vld [vmem:[#allocation5_spill] sm:$0xff] }
 0x26a   :  { %v905_v27 = vsel %vm904_vm10, %v900_v39, inf  ;;  %v919_v57 = vsel %vm918_vm11, %v914_v5, inf  ;;  %v3733_v39 = vld [vmem:[#allocation10_spill] sm:$0xff]  ;;  %v3734_v5 = vld [vmem:[#allocation11_spill] sm:$0xff] }
 0x26b   :  { %906 = vmin.xlane.f32.xlu1 %v905_v27  ;;  %920 = vmin.xlane.f32.xlu0 %v919_v57 }
 0x26c   :  { %v3174_v25 = vpop.xlane.xlu1 %930  ;;  %v3176_v4 = vpop.xlane.xlu0 %944 }
 0x26d   :  { %vm932_vm12 = vcmp.eq.f32.partialorder %v3727_v22, %v3174_v25  ;;  %vm946_vm13 = vcmp.eq.f32.partialorder %v3728_v19, %v3176_v4 }
 0x26e   :  { %v933_v3 = vsel %vm932_vm12, %v928_v29, inf  ;;  %v947_v46 = vsel %vm946_vm13, %v942_v42, inf  ;;  %v615_v29 = vcvt.f32.s32 %v3058_v56  ;;  %v629_v42 = vcvt.f32.s32 %v3064_v58 }
 0x26f   :  { %934 = vmin.xlane.f32.xlu1 %v933_v3  ;;  %948 = vmin.xlane.f32.xlu0 %v947_v46  ;;  %v643_v3 = vcvt.f32.s32 %v3066_v47  ;;  %v2417_v56 = vmov 1.0  }
 0x270   :  { %v3184_v11 = vpop.xlane.xlu1 %958  ;;  %v3186_v61 = vpop.xlane.xlu0 %972  ;;  %v616_v19 = vshll.u32 %v615_v29, 16  ;;  %v630_v40 = vshll.u32 %v629_v42, 16 }
 0x271   :  { %vm960_vm14 = vcmp.eq.f32.partialorder %v3729_v8, %v3184_v11  ;;  %vm974_vm15 = vcmp.eq.f32.partialorder %v3730_v2, %v3186_v61 }
 0x272   :  { %v961_v16 = vsel %vm960_vm14, %v956_v38, inf  ;;  %v975_v59 = vsel %vm974_vm15, %v970_v37, inf  ;;  %v657_v38 = vcvt.f32.s32 %v3074_v21  ;;  %v671_v37 = vcvt.f32.s32 %v3076_v32 }
 0x273   :  { %962 = vmin.xlane.f32.xlu1 %v961_v16  ;;  %976 = vmin.xlane.f32.xlu0 %v975_v59  ;;  %v644_v16 = vshll.u32 %v643_v3, 16  ;;  %v685_v21 = vcvt.f32.s32 %v3084_v36  ;;  %v699_v32 = vcvt.f32.s32 %v3086_v1 }
 0x274   :  { %v3194_v43 = vpop.xlane.xlu1 %986  ;;  %v3196_v62 = vpop.xlane.xlu0 %1000 }
 0x275   :  { %vm988_vm1 = vcmp.eq.f32.partialorder %v3731_v23, %v3194_v43  ;;  %vm1002_vm2 = vcmp.eq.f32.partialorder %v3732_v53, %v3196_v62  ;;  %v686_v1 = vshll.u32 %v685_v21, 16 }
 0x276   :  { %v989_v60 = vsel %vm988_vm1, %v984_v15, inf  ;;  %v1003_v17 = vsel %vm1002_vm2, %v998_v34, inf  ;;  %v658_v15 = vshll.u32 %v657_v38, 16  ;;  %v672_v34 = vshll.u32 %v671_v37, 16 }
 0x277   :  { %990 = vmin.xlane.f32.xlu1 %v989_v60  ;;  %1004 = vmin.xlane.f32.xlu0 %v1003_v17 }
 0x278   :  { %v3203_v20 = vpop.xlane.xlu1 %1014  ;;  %v3205_v24 = vpop.xlane.xlu0 %1028 }
 0x279   :  { %vm1016_vm3 = vcmp.eq.f32.partialorder %v3733_v39, %v3203_v20  ;;  %vm1030_vm4 = vcmp.eq.f32.partialorder %v3734_v5, %v3205_v24  ;;  %v713_v39 = vcvt.f32.s32 %v3094_v9  ;;  %v727_v5 = vcvt.f32.s32 %v3096_v10 }
 0x27a   :  { %v1017_v49 = vsel %vm1016_vm3, %v1012_v12, inf  ;;  %v1031_v27 = vsel %vm1030_vm4, %v1026_v28, inf  ;;  %v700_v28 = vshll.u32 %v699_v32, 16  ;;  %v797_v32 = vcvt.f32.s32 %v3124_v52 }
 0x27b   :  { %1018 = vmin.xlane.f32.xlu1 %v1017_v49  ;;  %1032 = vmin.xlane.f32.xlu0 %v1031_v27  ;;  %v714_v10 = vshll.u32 %v713_v39, 16  ;;  %v728_v42 = vshll.u32 %v727_v5, 16  ;;  %v825_v39 = vcvt.f32.s32 %v3134_v45  ;;  %v839_v5 = vcvt.f32.s32 %v3136_v6 }
 0x27c   :  { %v3211_v57 = vpop.xlane.xlu1 %1042 }
 0x27d   :  { %vm1044_vm5 = vcmp.eq.f32.partialorder %v3735_v51, %v3211_v57  ;;  %v826_v6 = vshll.u32 %v825_v39, 16 }
 0x27e   :  { %v1045_v35 = vsel %vm1044_vm5, %v1040_v7, inf }
 0x27f   :  { %1046 = vmin.xlane.f32.xlu1 %v1045_v35 }
 0x2cc   :  { %v613_v22 = vpop.xlane.xlu0 %612 }
 0x2cd   :  { %v614_v46 = vcvt.f32.s32 %v613_v22  ;;  %v741_v22 = vcvt.f32.s32 %v3104_v18 }
 0x2cf   :  { %v617_v31 = vadd.s32 %v616_v19, %v614_v46  ;;  %v755_v19 = vcvt.f32.s32 %v3106_v54  ;;  %v742_v54 = vshll.u32 %v741_v22, 16  ;;  %v867_v22 = vcvt.f32.s32 %v3146_v55 }
 0x2d0   :  { %v627_v8 = vpop.xlane.xlu1 %626  ;;  %v641_v2 = vpop.xlane.xlu0 %640 }
 0x2d1   :  { %v628_v59 = vcvt.f32.s32 %v627_v8  ;;  %v642_v44 = vcvt.f32.s32 %v641_v2  ;;  %vm1052_vm6 = vcmp.eq.s32.totalorder %v3736_v14, %v617_v31  ;;  %v756_v8 = vshll.u32 %v755_v19, 16 }
 0x2d2   :  { %2220 = vmatprep.mubr.msk.f32.mxu1 %vm1052_vm6, %v2417_v56  ;;  %v769_v2 = vcvt.f32.s32 %v3114_v0 }
 0x2d3   :  { %v631_v47 = vadd.s32 %v630_v40, %v628_v59  ;;  %v645_v58 = vadd.s32 %v644_v16, %v642_v44  ;;  %v783_v16 = vcvt.f32.s32 %v3116_v30 }
 0x2d4   :  { %v655_v23 = vpop.xlane.xlu1 %654  ;;  %v669_v53 = vpop.xlane.xlu0 %668  ;;  %v770_v30 = vshll.u32 %v769_v2, 16 }
 0x2d5   :  { %vm1053_vm7 = vcmp.eq.s32.totalorder %v3736_v14, %v631_v47  ;;  %v656_v60 = vcvt.f32.s32 %v655_v23  ;;  %v670_v17 = vcvt.f32.s32 %v669_v53  ;;  %vm1054_vm8 = vcmp.eq.s32.totalorder %v3736_v14, %v645_v58 }
 0x2d6   :  { %vm3230_vm9 = vmpackc.low %vm1053_vm7, %vm1052_vm6  ;;  %2221 = vmatmul.mubr.msk.f32.vlgmr.msra.gmra.mrb[0].mxu1 %vm1053_vm7, %v2417_v56  ;;  %v784_v21 = vshll.u32 %v783_v16, 16  ;;  %v811_v23 = vcvt.f32.s32 %v3126_v26  ;;  %v798_v26 = vshll.u32 %v797_v32, 16 }
 0x2d7   :  { %v659_v12 = vadd.s32 %v658_v15, %v656_v60  ;;  %v673_v36 = vadd.s32 %v672_v34, %v670_v17  ;;  %2223 = vmatprep.mubr.msk.f32.mxu1 %vm1054_vm8, %v2417_v56 }
 0x2d8   :  { %v683_v49 = vpop.xlane.xlu1 %682  ;;  %v697_v27 = vpop.xlane.xlu0 %696 }
 0x2d9   :  { %v684_v7 = vcvt.f32.s32 %v683_v49  ;;  %v698_v51 = vcvt.f32.s32 %v697_v27  ;;  %vm1055_vm10 = vcmp.eq.s32.totalorder %v3736_v14, %v659_v12  ;;  %vm1056_vm11 = vcmp.eq.s32.totalorder %v3736_v14, %v673_v36 }
 0x2da   :  { %2224 = vmatmul.mubr.msk.f32.gmra.mrb[2].mxu1 %vm1055_vm10, %v2417_v56  ;;  %vm3245_vm12 = vmpackc.low %vm1055_vm10, %vm1054_vm8 }
 0x2db   :  { %v687_v29 = vadd.s32 %v686_v1, %v684_v7  ;;  %v701_v9 = vadd.s32 %v700_v28, %v698_v51  ;;  %2226 = vmatprep.mubr.msk.f32.mxu1 %vm1056_vm11, %v2417_v56  ;;  %v812_v28 = vshll.u32 %v811_v23, 16 }
 0x2dc   :  { %v711_v3 = vpop.xlane.xlu1 %710  ;;  %v725_v46 = vpop.xlane.xlu0 %724 }
 0x2dd   :  { %v712_v31 = vcvt.f32.s32 %v711_v3  ;;  %v726_v40 = vcvt.f32.s32 %v725_v46  ;;  %vm1057_vm13 = vcmp.eq.s32.totalorder %v3736_v14, %v687_v29  ;;  %vm1058_vm14 = vcmp.eq.s32.totalorder %v3736_v14, %v701_v9 }
 0x2de   :  { %2227 = vmatmul.mubr.msk.f32.gmra.mrb[4].mxu1 %vm1057_vm13, %v2417_v56  ;;  %vm3259_vm15 = vmpackc.low %vm1057_vm13, %vm1056_vm11  ;;  %v2419_v29 = vmov 0.0  }
 0x2df   :  { %v715_v37 = vadd.s32 %v714_v10, %v712_v31  ;;  %v729_v18 = vadd.s32 %v728_v42, %v726_v40  ;;  %2229 = vmatprep.mubr.msk.f32.mxu1 %vm1058_vm14, %v2417_v56  ;;  %v840_v10 = vshll.u32 %v839_v5, 16  ;;  %v853_v42 = vcvt.f32.s32 %v3144_v41  ;;  %v2385_v40 = vld [vmem:[%s3696_s0 + $0x8] sm:$0xff] }
 0x2e0   :  { %v739_v59 = vpop.xlane.xlu1 %738  ;;  %v753_v44 = vpop.xlane.xlu0 %752  ;;  %v881_v41 = vcvt.f32.s32 %v3154_v63 }
 0x2e1   :  { %v740_v47 = vcvt.f32.s32 %v739_v59  ;;  %v754_v58 = vcvt.f32.s32 %v753_v44  ;;  %vm1059_vm1 = vcmp.eq.s32.totalorder %v3736_v14, %v715_v37  ;;  %vm1060_vm2 = vcmp.eq.s32.totalorder %v3736_v14, %v729_v18 }
 0x2e2   :  { %2230 = vmatmul.mubr.msk.f32.gmra.mrb[6].mxu1 %vm1059_vm1, %v2417_v56  ;;  %vm3273_vm3 = vmpackc.low %vm1059_vm1, %vm1058_vm14  ;;  %v854_v18 = vshll.u32 %v853_v42, 16  ;;  %v993_v42 = vcvt.f32.s32 %v3194_v43 }
 0x2e3   :  { %v743_v34 = vadd.s32 %v742_v54, %v740_v47  ;;  %v757_v0 = vadd.s32 %v756_v8, %v754_v58  ;;  %2232 = vmatprep.mubr.msk.f32.mxu1 %vm1060_vm2, %v2417_v56  ;;  %v868_v54 = vshll.u32 %v867_v22, 16  ;;  %v895_v8 = vcvt.f32.s32 %v3156_v50 }
 0x2e4   :  { %v767_v53 = vpop.xlane.xlu1 %766  ;;  %v781_v60 = vpop.xlane.xlu0 %780  ;;  %v882_v47 = vshll.u32 %v881_v41, 16  ;;  %v1007_v22 = vcvt.f32.s32 %v3196_v62  ;;  %v994_v62 = vshll.u32 %v993_v42, 16  ;;  %v2391_v42 = vld [vmem:[%s3696_s0 + $0x38] sm:$0xff] }
 0x2e5   :  { %v768_v17 = vcvt.f32.s32 %v767_v53  ;;  %v782_v12 = vcvt.f32.s32 %v781_v60  ;;  %vm1061_vm4 = vcmp.eq.s32.totalorder %v3736_v14, %v743_v34  ;;  %vm1062_vm5 = vcmp.eq.s32.totalorder %v3736_v14, %v757_v0 }
 0x2e6   :  { %2233 = vmatmul.mubr.msk.f32.gmra.mrb[8].mxu1 %vm1061_vm4, %v2417_v56  ;;  %vm3287_vm6 = vmpackc.low %vm1061_vm4, %vm1060_vm2  ;;  %v896_v50 = vshll.u32 %v895_v8, 16  ;;  %v909_v0 = vcvt.f32.s32 %v3164_v13  ;;  %v2418_v13 = vmov 1.0|1.0   ;;  %v1008_v38 = vshll.u32 %v1007_v22, 16 }
 0x2e7   :  { %v771_v1 = vadd.s32 %v770_v30, %v768_v17  ;;  %v785_v52 = vadd.s32 %v784_v21, %v782_v12  ;;  %2235 = vmatprep.mubr.msk.f32.mxu1 %vm1062_vm5, %v2417_v56  ;;  %v923_v30 = vcvt.f32.s32 %v3166_v33 }
 0x2e8   :  { %v795_v49 = vpop.xlane.xlu1 %794  ;;  %v809_v27 = vpop.xlane.xlu0 %808  ;;  %v910_v33 = vshll.u32 %v909_v0, 16 }
 0x2e9   :  { %v796_v7 = vcvt.f32.s32 %v795_v49  ;;  %v810_v51 = vcvt.f32.s32 %v809_v27  ;;  %vm1063_vm7 = vcmp.eq.s32.totalorder %v3736_v14, %v771_v1  ;;  %vm1064_vm8 = vcmp.eq.s32.totalorder %v3736_v14, %v785_v52 }
 0x2ea   :  { %2236 = vmatmul.mubr.msk.f32.gmra.mrb[10].mxu1 %vm1063_vm7, %v2417_v56  ;;  %vm3301_vm10 = vmpackc.low %vm1063_vm7, %vm1062_vm5  ;;  %v924_v12 = vshll.u32 %v923_v30, 16  ;;  %v937_v1 = vcvt.f32.s32 %v3174_v25  ;;  %v951_v52 = vcvt.f32.s32 %v3176_v4  ;;  %v965_v27 = vcvt.f32.s32 %v3184_v11 }
 0x2eb   :  { %v799_v9 = vadd.s32 %v798_v26, %v796_v7  ;;  %v813_v45 = vadd.s32 %v812_v28, %v810_v51  ;;  %2238 = vmatprep.mubr.msk.f32.mxu1 %vm1064_vm8, %v2417_v56  ;;  %v979_v7 = vcvt.f32.s32 %v3186_v61 }
 0x2ec   :  { %v823_v19 = vpop.xlane.xlu1 %822  ;;  %v837_v3 = vpop.xlane.xlu0 %836  ;;  %v938_v4 = vshll.u32 %v937_v1, 16  ;;  %v952_v48 = vshll.u32 %v951_v52, 16  ;;  %v966_v61 = vshll.u32 %v965_v27, 16 }
 0x2ed   :  { %v824_v46 = vcvt.f32.s32 %v823_v19  ;;  %v838_v31 = vcvt.f32.s32 %v837_v3  ;;  %vm1065_vm11 = vcmp.eq.s32.totalorder %v3736_v14, %v799_v9  ;;  %vm1066_vm13 = vcmp.eq.s32.totalorder %v3736_v14, %v813_v45 }
 0x2ee   :  { %2239 = vmatmul.mubr.msk.f32.gmra.mrb[12].mxu1 %vm1065_vm11, %v2417_v56  ;;  %vm3315_vm14 = vmpackc.low %vm1065_vm11, %vm1064_vm8  ;;  %v980_v35 = vshll.u32 %v979_v7, 16 }
 0x2ef   :  { %v827_v37 = vadd.s32 %v826_v6, %v824_v46  ;;  %v841_v55 = vadd.s32 %v840_v10, %v838_v31  ;;  %2241 = vmatprep.mubr.msk.f32.mxu1 %vm1066_vm13, %v2417_v56 }
 0x2f0   :  { %v851_v2 = vpop.xlane.xlu1 %850  ;;  %v865_v16 = vpop.xlane.xlu0 %864 }
 0x2f1   :  { %v852_v59 = vcvt.f32.s32 %v851_v2  ;;  %v866_v44 = vcvt.f32.s32 %v865_v16  ;;  %vm1067_vm1 = vcmp.eq.s32.totalorder %v3736_v14, %v827_v37  ;;  %vm1068_vm2 = vcmp.eq.s32.totalorder %v3736_v14, %v841_v55 }
 0x2f2   :  { %2242 = vmatmul.mubr.msk.f32.gmra.mrb[14].mxu1 %vm1067_vm1, %v2417_v56  ;;  %vm3329_vm4 = vmpackc.low %vm1067_vm1, %vm1066_vm13  ;;  %v1021_v37 = vcvt.f32.s32 %v3203_v20  ;;  %v1035_v55 = vcvt.f32.s32 %v3205_v24 }
 0x2f3   :  { %v855_v58 = vadd.s32 %v854_v18, %v852_v59  ;;  %v869_v34 = vadd.s32 %v868_v54, %v866_v44  ;;  %2244 = vmatprep.mubr.msk.f32.mxu1 %vm1068_vm2, %v2417_v56  ;;  %v1049_v59 = vcvt.f32.s32 %v3211_v57 }
 0x2f4   :  { %v879_v21 = vpop.xlane.xlu1 %878  ;;  %v893_v32 = vpop.xlane.xlu0 %892  ;;  %v1022_v24 = vshll.u32 %v1021_v37, 16  ;;  %v1036_v15 = vshll.u32 %v1035_v55, 16 }
 0x2f5   :  { %v880_v23 = vcvt.f32.s32 %v879_v21  ;;  %v894_v53 = vcvt.f32.s32 %v893_v32  ;;  %vm1069_vm5 = vcmp.eq.s32.totalorder %v3736_v14, %v855_v58  ;;  %vm1070_vm7 = vcmp.eq.s32.totalorder %v3736_v14, %v869_v34 }
 0x2f6   :  { %2245 = vmatmul.mubr.msk.f32.gmra.mrb[16].mxu1 %vm1069_vm5, %v2417_v56  ;;  %vm2348_vm8 = vmpackc.low %vm1069_vm5, %vm1068_vm2  ;;  %v1050_v36 = vshll.u32 %v1049_v59, 16  ;;  %v2394_v59 = vld [vmem:[%s3696_s0 + $0x40] sm:$0xff] }
 0x2f7   :  { %v883_v60 = vadd.s32 %v882_v47, %v880_v23  ;;  %v897_v17 = vadd.s32 %v896_v50, %v894_v53  ;;  %2247 = vmatprep.mubr.msk.f32.mxu1 %vm1070_vm7, %v2417_v56  ;;  %2349 = vmatprep.subr.msk.bf16.mxu1 %vm2348_vm8, %v2418_v13 }
 0x2f8   :  { %v907_v26 = vpop.xlane.xlu1 %906  ;;  %2351 = vmatpush3.bf16.msk.msra.mxu1 %vm3230_vm9, %v2418_v13  ;;  %v921_v28 = vpop.xlane.xlu0 %920 }
 0x2f9   :  { %v908_v39 = vcvt.f32.s32 %v907_v26  ;;  %v922_v5 = vcvt.f32.s32 %v921_v28  ;;  %vm1071_vm11 = vcmp.eq.s32.totalorder %v3736_v14, %v883_v60  ;;  %vm1072_vm13 = vcmp.eq.s32.totalorder %v3736_v14, %v897_v17  ;;  %v2388_v26 = vld [vmem:[%s3696_s0 + $0x10] sm:$0xff] }
 0x2fa   :  { %2248 = vmatmul.mubr.msk.f32.gmra.mrb[18].mxu1 %vm1071_vm11, %v2417_v56  ;;  %vm2352_vm1 = vmpackc.low %vm1071_vm11, %vm1070_vm7 }
 0x2fb   :  { %v911_v25 = vadd.s32 %v910_v33, %v908_v39  ;;  %v925_v49 = vadd.s32 %v924_v12, %v922_v5  ;;  %2250 = vmatprep.mubr.msk.f32.mxu1 %vm1072_vm13, %v2417_v56  ;;  %2353 = vmatprep.subr.msk.bf16.mxu1 %vm2352_vm1, %v2418_v13  ;;  %v2387_v33 = vld [vmem:[%s3696_s0 + $0x18] sm:$0xff] }
 0x2fc   :  { %v935_v51 = vpop.xlane.xlu1 %934  ;;  %2355 = vmatpush3.bf16.msk.msra.mxu1 %vm3245_vm12, %v2418_v13  ;;  %v949_v9 = vpop.xlane.xlu0 %948 }
 0x2fd   :  { %v936_v45 = vcvt.f32.s32 %v935_v51  ;;  %v950_v6 = vcvt.f32.s32 %v949_v9  ;;  %vm1073_vm9 = vcmp.eq.s32.totalorder %v3736_v14, %v911_v25  ;;  %vm1074_vm2 = vcmp.eq.s32.totalorder %v3736_v14, %v925_v49  ;;  %v2390_v9 = vld [vmem:[%s3696_s0 + $0x20] sm:$0xff] }
 0x2fe   :  { %2251 = vmatmul.mubr.msk.f32.gmra.mrb[20].mxu1 %vm1073_vm9, %v2417_v56  ;;  %vm2356_vm5 = vmpackc.low %vm1073_vm9, %vm1072_vm13 }
 0x2ff   :  { %v939_v11 = vadd.s32 %v938_v4, %v936_v45  ;;  %v953_v10 = vadd.s32 %v952_v48, %v950_v6  ;;  %2253 = vmatprep.mubr.msk.f32.mxu1 %vm1074_vm2, %v2417_v56  ;;  %2357 = vmatprep.subr.msk.bf16.mxu1 %vm2356_vm5, %v2418_v13  ;;  %v2389_v4 = vld [vmem:[%s3696_s0 + $0x28] sm:$0xff] }
 0x300   :  { %v963_v19 = vpop.xlane.xlu1 %962  ;;  %2359 = vmatpush3.bf16.msk.msra.mxu1 %vm3259_vm15, %v2418_v13  ;;  %v977_v3 = vpop.xlane.xlu0 %976 }
 0x301   :  { %v964_v46 = vcvt.f32.s32 %v963_v19  ;;  %v978_v31 = vcvt.f32.s32 %v977_v3  ;;  %vm1075_vm12 = vcmp.eq.s32.totalorder %v3736_v14, %v939_v11  ;;  %vm1076_vm7 = vcmp.eq.s32.totalorder %v3736_v14, %v953_v10 }
 0x302   :  { %2254 = vmatmul.mubr.msk.f32.gmra.mrb[22].mxu1 %vm1075_vm12, %v2417_v56  ;;  %vm2360_vm8 = vmpackc.low %vm1075_vm12, %vm1074_vm2 }
 0x303   :  { %v967_v43 = vadd.s32 %v966_v61, %v964_v46  ;;  %v981_v41 = vadd.s32 %v980_v35, %v978_v31  ;;  %2256 = vmatprep.mubr.msk.f32.mxu1 %vm1076_vm7, %v2417_v56  ;;  %2361 = vmatprep.subr.msk.bf16.mxu1 %vm2360_vm8, %v2418_v13 }
 0x304   :  { %v991_v18 = vpop.xlane.xlu1 %990  ;;  %2363 = vmatpush3.bf16.msk.msra.mxu1 %vm3273_vm3, %v2418_v13  ;;  %v1005_v54 = vpop.xlane.xlu0 %1004 }
 0x305   :  { %v992_v8 = vcvt.f32.s32 %v991_v18  ;;  %v1006_v2 = vcvt.f32.s32 %v1005_v54  ;;  %vm1077_vm15 = vcmp.eq.s32.totalorder %v3736_v14, %v967_v43  ;;  %vm1078_vm11 = vcmp.eq.s32.totalorder %v3736_v14, %v981_v41  ;;  %v2392_v43 = vld [vmem:[%s3696_s0 + $0x30] sm:$0xff] }
 0x306   :  { %2257 = vmatmul.mubr.msk.f32.gmra.mrb[24].mxu1 %vm1077_vm15, %v2417_v56  ;;  %vm2364_vm13 = vmpackc.low %vm1077_vm15, %vm1076_vm7  ;;  %vm1603_vm7 = vcmp.lt.s32.totalorder %v3736_v14, 16 }
 0x307   :  { %v995_v20 = vadd.s32 %v994_v62, %v992_v8  ;;  %v1009_v16 = vadd.s32 %v1008_v38, %v1006_v2  ;;  %2259 = vmatprep.mubr.msk.f32.mxu1 %vm1078_vm11, %v2417_v56  ;;  %2365 = vmatprep.subr.msk.bf16.mxu1 %vm2364_vm13, %v2418_v13  ;;  %v2393_v8 = vld [vmem:[%s3696_s0 + $0x48] sm:$0xff] }
 0x308   :  { %v1019_v44 = vpop.xlane.xlu1 %1018  ;;  %2367 = vmatpush3.bf16.msk.msra.mxu1 %vm3287_vm6, %v2418_v13  ;;  %v1033_v47 = vpop.xlane.xlu0 %1032 }
 0x309   :  { %v1020_v58 = vcvt.f32.s32 %v1019_v44  ;;  %v1034_v34 = vcvt.f32.s32 %v1033_v47  ;;  %vm1079_vm3 = vcmp.eq.s32.totalorder %v3736_v14, %v995_v20  ;;  %vm1080_vm1 = vcmp.eq.s32.totalorder %v3736_v14, %v1009_v16 }
 0x30a   :  { %2260 = vmatmul.mubr.msk.f32.gmra.mrb[26].mxu1 %vm1079_vm3, %v2417_v56  ;;  %vm2368_vm9 = vmpackc.low %vm1079_vm3, %vm1078_vm11 }
 0x30b   :  { %v1023_v50 = vadd.s32 %v1022_v24, %v1020_v58  ;;  %v1037_v0 = vadd.s32 %v1036_v15, %v1034_v34  ;;  %2262 = vmatprep.mubr.msk.f32.mxu1 %vm1080_vm1, %v2417_v56  ;;  %2369 = vmatprep.subr.msk.bf16.mxu1 %vm2368_vm9, %v2418_v13 }
 0x30c   :  { %v1047_v57 = vpop.xlane.xlu1 %1046  ;;  %2371 = vmatpush3.bf16.msk.msra.mxu1 %vm3301_vm10, %v2418_v13 }
 0x30d   :  { %v1048_v30 = vcvt.f32.s32 %v1047_v57  ;;  %vm1081_vm6 = vcmp.eq.s32.totalorder %v3736_v14, %v1023_v50  ;;  %vm1082_vm2 = vcmp.eq.s32.totalorder %v3736_v14, %v1037_v0 }
 0x30e   :  { %2263 = vmatmul.mubr.msk.f32.gmra.mrb[28].mxu1 %vm1081_vm6, %v2417_v56  ;;  %vm2372_vm5 = vmpackc.low %vm1081_vm6, %vm1080_vm1 }
 0x30f   :  { %v1051_v21 = vadd.s32 %v1050_v36, %v1048_v30  ;;  %2265 = vmatprep.mubr.msk.f32.mxu1 %vm1082_vm2, %v2417_v56  ;;  %2373 = vmatprep.subr.msk.bf16.mxu1 %vm2372_vm5, %v2418_v13  ;;  %v2395_v36 = vld [vmem:[%s3696_s0 + $0x58] sm:$0xff] }
 0x310   :  { %2375 = vmatpush3.bf16.msk.msra.mxu1 %vm3315_vm14, %v2418_v13 }
 0x311   :  { %vm1083_vm10 = vcmp.eq.s32.totalorder %v3736_v14, %v1051_v21  ;;  %v2386_v14 = vld [vmem:[%s3696_s0] sm:$0xff] }
 0x312   :  { %2266 = vmatmul.mubr.msk.f32.gmra.mrb[30].mxu1 %vm1083_vm10, %v2417_v56  ;;  %vm2376_vm12 = vmpackc.low %vm1083_vm10, %vm1082_vm2 }
 0x313   :  { %2377 = vmatprep.subr.msk.bf16.mxu1 %vm2376_vm12, %v2418_v13  ;;  %1809 = vmatprep.mubr.f32.mxu1 %v2419_v29 }
 0x314   :  { %2379 = vmatpush3.bf16.msk.msra.mxu1 %vm3329_vm4, %v2418_v13 }
 0x317   :  { %1976 = vmatmul.mubr.msk.f32.vlgmr.msra.gmra.mrb[32].mxu1 %vm1603_vm7, %v2417_v56 }
 0x3a9   :  { %v2222_v32 = vpop.f32.mrb[0].mxu1 }
 0x3aa   :  { %1374 = vst.msk [vmem:[%s3698_s3 + $0x8] sm:$0xff] %vm65_vm0, %v2222_v32  ;;  %v1406_v23 = vsub.f32 %v2222_v32, %v2385_v40  ;;  %v1214_v53 = vpop.f32.mrb[1].mxu1 }
 0x3ab   :  { %1373 = vst.msk [vmem:[%s3698_s3] sm:$0xff] %vm65_vm0, %v1214_v53  ;;  %v1405_v56 = vsub.f32 %v1214_v53, %v2386_v14 }
 0x3ac   :  { %v1610_v63 = vmul.f32 %v1406_v23, %v1406_v23  ;;  %v2396_v23 = vld [vmem:[%s3696_s0 + $0x50] sm:$0xff] }
 0x3ad   :  { %v1609_v60 = vmul.f32 %v1405_v56, %v1405_v56  ;;  %v2225_v17 = vpop.f32.mrb[2].mxu1 }
 0x3ae   :  { %v1674_v13 = vsel %vm65_vm0, %v1610_v63, 0.0  ;;  %1376 = vst.msk [vmem:[%s3698_s3 + $0x18] sm:$0xff] %vm65_vm0, %v2225_v17  ;;  %v1408_v12 = vsub.f32 %v2225_v17, %v2387_v33  ;;  %v1224_v1 = vpop.f32.mrb[3].mxu1  ;;  %v2397_v33 = vld [vmem:[%s3696_s0 + $0x68] sm:$0xff] }
 0x3af   :  { %v1673_v52 = vsel %vm65_vm0, %v1609_v60, 0.0  ;;  %1375 = vst.msk [vmem:[%s3698_s3 + $0x10] sm:$0xff] %vm65_vm0, %v1224_v1  ;;  %v1407_v28 = vsub.f32 %v1224_v1, %v2388_v26 }
 0x3b0   :  { %v1675_v39 = vadd.f32 %v1674_v13, %v1673_v52  ;;  %v1612_v5 = vmul.f32 %v1408_v12, %v1408_v12 }
 0x3b1   :  { %v1611_v25 = vmul.f32 %v1407_v28, %v1407_v28  ;;  %v2228_v49 = vpop.f32.mrb[4].mxu1 }
 0x3b2   :  { %1378 = vst.msk [vmem:[%s3698_s3 + $0x28] sm:$0xff] %vm65_vm0, %v2228_v49  ;;  %v1410_v48 = vsub.f32 %v2228_v49, %v2389_v4  ;;  %v1234_v27 = vpop.f32.mrb[5].mxu1  ;;  %v1644_v7 = vmul.f32 0.0, %v1612_v5 }
 0x3b3   :  { %v1643_v51 = vmul.f32 0.0, %v1611_v25  ;;  %1377 = vst.msk [vmem:[%s3698_s3 + $0x20] sm:$0xff] %vm65_vm0, %v1234_v27  ;;  %v1409_v45 = vsub.f32 %v1234_v27, %v2390_v9 }
 0x3b4   :  { %v1614_v6 = vmul.f32 %v1410_v48, %v1410_v48  ;;  %v1678_v3 = vsel %vm65_vm0, %v1644_v7, 0.0 }
 0x3b5   :  { %v1676_v11 = vsel %vm65_vm0, %v1643_v51, 0.0  ;;  %v1613_v10 = vmul.f32 %v1409_v45, %v1409_v45  ;;  %v2231_v61 = vpop.f32.mrb[6].mxu1  ;;  %v2399_v51 = vld [vmem:[%s3696_s0 + $0x78] sm:$0xff] }
 0x3b6   :  { %v1677_v35 = vadd.f32 %v1676_v11, %v1675_v39  ;;  %1380 = vst.msk [vmem:[%s3698_s3 + $0x38] sm:$0xff] %vm65_vm0, %v2231_v61  ;;  %v1412_v22 = vsub.f32 %v2231_v61, %v2391_v42  ;;  %v1244_v19 = vpop.f32.mrb[7].mxu1  ;;  %v1646_v46 = vmul.f32 0.0, %v1614_v6  ;;  %v2398_v39 = vld [vmem:[%s3696_s0 + $0x60] sm:$0xff]  ;;  %v2400_v61 = vld [vmem:[%s3696_s0 + $0x70] sm:$0xff] }
 0x3b7   :  { %v1645_v31 = vmul.f32 0.0, %v1613_v10  ;;  %1379 = vst.msk [vmem:[%s3698_s3 + $0x30] sm:$0xff] %vm65_vm0, %v1244_v19  ;;  %v1411_v41 = vsub.f32 %v1244_v19, %v2392_v43  ;;  %v2401_v43 = vld [vmem:[%s3696_s0 + $0x88] sm:$0xff] }
 0x3b8   :  { %v1679_v62 = vadd.f32 %v1678_v3, %v1677_v35  ;;  %v1616_v38 = vmul.f32 %v1412_v22, %v1412_v22  ;;  %v1682_v16 = vsel %vm65_vm0, %v1646_v46, 0.0 }
 0x3b9   :  { %v1680_v37 = vsel %vm65_vm0, %v1645_v31, 0.0  ;;  %v1615_v55 = vmul.f32 %v1411_v41, %v1411_v41  ;;  %v2234_v18 = vpop.f32.mrb[8].mxu1 }
 0x3ba   :  { %v1681_v54 = vadd.f32 %v1680_v37, %v1679_v62  ;;  %1382 = vst.msk [vmem:[%s3698_s3 + $0x48] sm:$0xff] %vm65_vm0, %v2234_v18  ;;  %v1414_v2 = vsub.f32 %v2234_v18, %v2393_v8  ;;  %v1254_v20 = vpop.f32.mrb[9].mxu1  ;;  %v1648_v24 = vmul.f32 0.0, %v1616_v38  ;;  %v2402_v18 = vld [vmem:[%s3696_s0 + $0x80] sm:$0xff] }
 0x3bb   :  { %v1647_v15 = vmul.f32 0.0, %v1615_v55  ;;  %1381 = vst.msk [vmem:[%s3698_s3 + $0x40] sm:$0xff] %vm65_vm0, %v1254_v20  ;;  %v1413_v44 = vsub.f32 %v1254_v20, %v2394_v59  ;;  %v2403_v59 = vld [vmem:[%s3696_s0 + $0x98] sm:$0xff] }
 0x3bc   :  { %v1683_v47 = vadd.f32 %v1682_v16, %v1681_v54  ;;  %v1618_v58 = vmul.f32 %v1414_v2, %v1414_v2  ;;  %v1686_v29 = vsel %vm65_vm0, %v1648_v24, 0.0 }
 0x3bd   :  { %v1684_v34 = vsel %vm65_vm0, %v1647_v15, 0.0  ;;  %v1617_v50 = vmul.f32 %v1413_v44, %v1413_v44  ;;  %v2237_v0 = vpop.f32.mrb[10].mxu1 }
 0x3be   :  { %v1685_v57 = vadd.f32 %v1684_v34, %v1683_v47  ;;  %1384 = vst.msk [vmem:[%s3698_s3 + $0x58] sm:$0xff] %vm65_vm0, %v2237_v0  ;;  %v1416_v30 = vsub.f32 %v2237_v0, %v2395_v36  ;;  %v1264_v21 = vpop.f32.mrb[11].mxu1  ;;  %v1650_v32 = vmul.f32 0.0, %v1618_v58  ;;  %v2404_v0 = vld [vmem:[%s3696_s0 + $0x90] sm:$0xff] }
 0x3bf   :  { %v1649_v40 = vmul.f32 0.0, %v1617_v50  ;;  %1383 = vst.msk [vmem:[%s3698_s3 + $0x50] sm:$0xff] %vm65_vm0, %v1264_v21  ;;  %v1415_v53 = vsub.f32 %v1264_v21, %v2396_v23  ;;  %v2405_v23 = vld [vmem:[%s3696_s0 + $0xa8] sm:$0xff] }
 0x3c0   :  { %v1687_v14 = vadd.f32 %v1686_v29, %v1685_v57  ;;  %v1620_v56 = vmul.f32 %v1416_v30, %v1416_v30  ;;  %v1690_v52 = vsel %vm65_vm0, %v1650_v32, 0.0 }
 0x3c1   :  { %v1688_v63 = vsel %vm65_vm0, %v1649_v40, 0.0  ;;  %v1619_v60 = vmul.f32 %v1415_v53, %v1415_v53  ;;  %v2240_v17 = vpop.f32.mrb[12].mxu1 }
 0x3c2   :  { %v1689_v13 = vadd.f32 %v1688_v63, %v1687_v14  ;;  %1386 = vst.msk [vmem:[%s3698_s3 + $0x68] sm:$0xff] %vm65_vm0, %v2240_v17  ;;  %v1418_v12 = vsub.f32 %v2240_v17, %v2397_v33  ;;  %v1274_v1 = vpop.f32.mrb[13].mxu1  ;;  %v1652_v26 = vmul.f32 0.0, %v1620_v56  ;;  %v2406_v17 = vld [vmem:[%s3696_s0 + $0xa0] sm:$0xff] }
 0x3c3   :  { %v1651_v28 = vmul.f32 0.0, %v1619_v60  ;;  %1385 = vst.msk [vmem:[%s3698_s3 + $0x60] sm:$0xff] %vm65_vm0, %v1274_v1  ;;  %v1417_v5 = vsub.f32 %v1274_v1, %v2398_v39  ;;  %v2407_v39 = vld [vmem:[%s3696_s0 + $0xb8] sm:$0xff] }
 0x3c4   :  { %v1691_v25 = vadd.f32 %v1690_v52, %v1689_v13  ;;  %v1622_v49 = vmul.f32 %v1418_v12, %v1418_v12  ;;  %v1694_v6 = vsel %vm65_vm0, %v1652_v26, 0.0 }
 0x3c5   :  { %v1692_v4 = vsel %vm65_vm0, %v1651_v28, 0.0  ;;  %v1621_v48 = vmul.f32 %v1417_v5, %v1417_v5  ;;  %v2243_v27 = vpop.f32.mrb[14].mxu1 }
 0x3c6   :  { %v1693_v7 = vadd.f32 %v1692_v4, %v1691_v25  ;;  %1388 = vst.msk [vmem:[%s3698_s3 + $0x78] sm:$0xff] %vm65_vm0, %v2243_v27  ;;  %v1420_v9 = vsub.f32 %v2243_v27, %v2399_v51  ;;  %v1284_v45 = vpop.f32.mrb[15].mxu1  ;;  %v1654_v11 = vmul.f32 0.0, %v1622_v49  ;;  %v2408_v27 = vld [vmem:[%s3696_s0 + $0xb0] sm:$0xff] }
 0x3c7   :  { %v1653_v10 = vmul.f32 0.0, %v1621_v48  ;;  %1387 = vst.msk [vmem:[%s3698_s3 + $0x70] sm:$0xff] %vm65_vm0, %v1284_v45  ;;  %v1419_v35 = vsub.f32 %v1284_v45, %v2400_v61  ;;  %v2409_v61 = vld [vmem:[%s3696_s0 + $0xc8] sm:$0xff] }
 0x3c8   :  { %v1695_v42 = vadd.f32 %v1694_v6, %v1693_v7  ;;  %v1624_v22 = vmul.f32 %v1420_v9, %v1420_v9  ;;  %v1698_v38 = vsel %vm65_vm0, %v1654_v11, 0.0 }
 0x3c9   :  { %v1696_v19 = vsel %vm65_vm0, %v1653_v10, 0.0  ;;  %v1623_v3 = vmul.f32 %v1419_v35, %v1419_v35  ;;  %v2246_v46 = vpop.f32.mrb[16].mxu1 }
 0x3ca   :  { %v1697_v31 = vadd.f32 %v1696_v19, %v1695_v42  ;;  %1390 = vst.msk [vmem:[%s3698_s3 + $0x88] sm:$0xff] %vm65_vm0, %v2246_v46  ;;  %v1422_v41 = vsub.f32 %v2246_v46, %v2401_v43  ;;  %v1294_v62 = vpop.f32.mrb[17].mxu1  ;;  %v1656_v37 = vmul.f32 0.0, %v1624_v22  ;;  %v2410_v46 = vld [vmem:[%s3696_s0 + $0xc0] sm:$0xff] }
 0x3cb   :  { %v1655_v55 = vmul.f32 0.0, %v1623_v3  ;;  %1389 = vst.msk [vmem:[%s3698_s3 + $0x80] sm:$0xff] %vm65_vm0, %v1294_v62  ;;  %v1421_v54 = vsub.f32 %v1294_v62, %v2402_v18  ;;  %v2411_v18 = vld [vmem:[%s3696_s0 + $0xd8] sm:$0xff] }
 0x3cc   :  { %v1699_v8 = vadd.f32 %v1698_v38, %v1697_v31  ;;  %v1626_v2 = vmul.f32 %v1422_v41, %v1422_v41  ;;  %v1702_v58 = vsel %vm65_vm0, %v1656_v37, 0.0 }
 0x3cd   :  { %v1700_v20 = vsel %vm65_vm0, %v1655_v55, 0.0  ;;  %v1625_v16 = vmul.f32 %v1421_v54, %v1421_v54  ;;  %v2249_v24 = vpop.f32.mrb[18].mxu1 }
 0x3ce   :  { %v1701_v15 = vadd.f32 %v1700_v20, %v1699_v8  ;;  %1392 = vst.msk [vmem:[%s3698_s3 + $0x98] sm:$0xff] %vm65_vm0, %v2249_v24  ;;  %v1424_v44 = vsub.f32 %v2249_v24, %v2403_v59  ;;  %v1304_v47 = vpop.f32.mrb[19].mxu1  ;;  %v1658_v34 = vmul.f32 0.0, %v1626_v2  ;;  %v2412_v24 = vld [vmem:[%s3696_s0 + $0xd0] sm:$0xff] }
 0x3cf   :  { %v1657_v50 = vmul.f32 0.0, %v1625_v16  ;;  %1391 = vst.msk [vmem:[%s3698_s3 + $0x90] sm:$0xff] %vm65_vm0, %v1304_v47  ;;  %v1423_v57 = vsub.f32 %v1304_v47, %v2404_v0  ;;  %v2413_v0 = vld [vmem:[%s3696_s0 + $0xe8] sm:$0xff] }
 0x3d0   :  { %v1703_v36 = vadd.f32 %v1702_v58, %v1701_v15  ;;  %v1628_v30 = vmul.f32 %v1424_v44, %v1424_v44  ;;  %v1706_v56 = vsel %vm65_vm0, %v1658_v34, 0.0 }
 0x3d1   :  { %v1704_v21 = vsel %vm65_vm0, %v1657_v50, 0.0  ;;  %v1627_v29 = vmul.f32 %v1423_v57, %v1423_v57  ;;  %v2252_v32 = vpop.f32.mrb[20].mxu1 }
 0x3d2   :  { %v1705_v40 = vadd.f32 %v1704_v21, %v1703_v36  ;;  %1394 = vst.msk [vmem:[%s3698_s3 + $0xa8] sm:$0xff] %vm65_vm0, %v2252_v32  ;;  %v1426_v53 = vsub.f32 %v2252_v32, %v2405_v23  ;;  %v1314_v14 = vpop.f32.mrb[21].mxu1  ;;  %v1660_v63 = vmul.f32 0.0, %v1628_v30  ;;  %v2414_v32 = vld [vmem:[%s3696_s0 + $0xe0] sm:$0xff] }
 0x3d3   :  { %v1659_v60 = vmul.f32 0.0, %v1627_v29  ;;  %1393 = vst.msk [vmem:[%s3698_s3 + $0xa0] sm:$0xff] %vm65_vm0, %v1314_v14  ;;  %v1425_v13 = vsub.f32 %v1314_v14, %v2406_v17  ;;  %v2415_v17 = vld [vmem:[%s3696_s0 + $0xf8] sm:$0xff] }
 0x3d4   :  { %v1707_v33 = vadd.f32 %v1706_v56, %v1705_v40  ;;  %v1630_v12 = vmul.f32 %v1426_v53, %v1426_v53  ;;  %v1710_v49 = vsel %vm65_vm0, %v1660_v63, 0.0 }
 0x3d5   :  { %v1708_v1 = vsel %vm65_vm0, %v1659_v60, 0.0  ;;  %v1629_v52 = vmul.f32 %v1425_v13, %v1425_v13  ;;  %v2255_v26 = vpop.f32.mrb[22].mxu1 }
 0x3d6   :  { %v1709_v28 = vadd.f32 %v1708_v1, %v1707_v33  ;;  %1396 = vst.msk [vmem:[%s3698_s3 + $0xb8] sm:$0xff] %vm65_vm0, %v2255_v26  ;;  %v1428_v5 = vsub.f32 %v2255_v26, %v2407_v39  ;;  %v1324_v25 = vpop.f32.mrb[23].mxu1  ;;  %v1662_v4 = vmul.f32 0.0, %v1630_v12  ;;  %v2416_v26 = vld [vmem:[%s3696_s0 + $0xf0] sm:$0xff] }
 0x3d7   :  { %v1661_v48 = vmul.f32 0.0, %v1629_v52  ;;  %1395 = vst.msk [vmem:[%s3698_s3 + $0xb0] sm:$0xff] %vm65_vm0, %v1324_v25  ;;  %v1427_v7 = vsub.f32 %v1324_v25, %v2408_v27 }
 0x3d8   :  { %v1711_v51 = vadd.f32 %v1710_v49, %v1709_v28  ;;  %v1632_v9 = vmul.f32 %v1428_v5, %v1428_v5  ;;  %v1714_v22 = vsel %vm65_vm0, %v1662_v4, 0.0 }
 0x3d9   :  { %v1712_v45 = vsel %vm65_vm0, %v1661_v48, 0.0  ;;  %v1631_v6 = vmul.f32 %v1427_v7, %v1427_v7  ;;  %v2258_v11 = vpop.f32.mrb[24].mxu1 }
 0x3da   :  { %v1713_v10 = vadd.f32 %v1712_v45, %v1711_v51  ;;  %1398 = vst.msk [vmem:[%s3698_s3 + $0xc8] sm:$0xff] %vm65_vm0, %v2258_v11  ;;  %v1430_v35 = vsub.f32 %v2258_v11, %v2409_v61  ;;  %v1334_v42 = vpop.f32.mrb[25].mxu1  ;;  %v1664_v19 = vmul.f32 0.0, %v1632_v9 }
 0x3db   :  { %v1663_v3 = vmul.f32 0.0, %v1631_v6  ;;  %1397 = vst.msk [vmem:[%s3698_s3 + $0xc0] sm:$0xff] %vm65_vm0, %v1334_v42  ;;  %v1429_v31 = vsub.f32 %v1334_v42, %v2410_v46 }
 0x3dc   :  { %v1715_v43 = vadd.f32 %v1714_v22, %v1713_v10  ;;  %v1634_v41 = vmul.f32 %v1430_v35, %v1430_v35  ;;  %v1718_v2 = vsel %vm65_vm0, %v1664_v19, 0.0 }
 0x3dd   :  { %v1716_v62 = vsel %vm65_vm0, %v1663_v3, 0.0  ;;  %v1633_v38 = vmul.f32 %v1429_v31, %v1429_v31  ;;  %v2261_v37 = vpop.f32.mrb[26].mxu1 }
 0x3de   :  { %v1717_v55 = vadd.f32 %v1716_v62, %v1715_v43  ;;  %1400 = vst.msk [vmem:[%s3698_s3 + $0xd8] sm:$0xff] %vm65_vm0, %v2261_v37  ;;  %v1432_v54 = vsub.f32 %v2261_v37, %v2411_v18  ;;  %v1344_v8 = vpop.f32.mrb[27].mxu1  ;;  %v1666_v20 = vmul.f32 0.0, %v1634_v41 }
 0x3df   :  { %v1665_v16 = vmul.f32 0.0, %v1633_v38  ;;  %1399 = vst.msk [vmem:[%s3698_s3 + $0xd0] sm:$0xff] %vm65_vm0, %v1344_v8  ;;  %v1431_v15 = vsub.f32 %v1344_v8, %v2412_v24 }
 0x3e0   :  { %v1719_v59 = vadd.f32 %v1718_v2, %v1717_v55  ;;  %v1636_v44 = vmul.f32 %v1432_v54, %v1432_v54  ;;  %v1722_v30 = vsel %vm65_vm0, %v1666_v20, 0.0 }
 0x3e1   :  { %v1720_v47 = vsel %vm65_vm0, %v1665_v16, 0.0  ;;  %v1635_v58 = vmul.f32 %v1431_v15, %v1431_v15  ;;  %v2264_v34 = vpop.f32.mrb[28].mxu1 }
 0x3e2   :  { %v1721_v50 = vadd.f32 %v1720_v47, %v1719_v59  ;;  %1402 = vst.msk [vmem:[%s3698_s3 + $0xe8] sm:$0xff] %vm65_vm0, %v2264_v34  ;;  %v1434_v57 = vsub.f32 %v2264_v34, %v2413_v0  ;;  %v1354_v36 = vpop.f32.mrb[29].mxu1  ;;  %v1668_v21 = vmul.f32 0.0, %v1636_v44 }
 0x3e3   :  { %v1667_v29 = vmul.f32 0.0, %v1635_v58  ;;  %1401 = vst.msk [vmem:[%s3698_s3 + $0xe0] sm:$0xff] %vm65_vm0, %v1354_v36  ;;  %v1433_v40 = vsub.f32 %v1354_v36, %v2414_v32 }
 0x3e4   :  { %v1723_v23 = vadd.f32 %v1722_v30, %v1721_v50  ;;  %v1638_v53 = vmul.f32 %v1434_v57, %v1434_v57  ;;  %v1726_v12 = vsel %vm65_vm0, %v1668_v21, 0.0 }
 0x3e5   :  { %v1724_v14 = vsel %vm65_vm0, %v1667_v29, 0.0  ;;  %v1637_v56 = vmul.f32 %v1433_v40, %v1433_v40  ;;  %v2267_v63 = vpop.f32.mrb[30].mxu1 }
 0x3e6   :  { %v1725_v60 = vadd.f32 %v1724_v14, %v1723_v23  ;;  %1404 = vst.msk [vmem:[%s3698_s3 + $0xf8] sm:$0xff] %vm65_vm0, %v2267_v63  ;;  %v1436_v13 = vsub.f32 %v2267_v63, %v2415_v17  ;;  %v1364_v33 = vpop.f32.mrb[31].mxu1  ;;  %v1670_v1 = vmul.f32 0.0, %v1638_v53 }
 0x3e7   :  { %v1669_v52 = vmul.f32 0.0, %v1637_v56  ;;  %1403 = vst.msk [vmem:[%s3698_s3 + $0xf0] sm:$0xff] %vm65_vm0, %v1364_v33  ;;  %v1435_v28 = vsub.f32 %v1364_v33, %v2416_v26 }
 0x3e8   :  { %v1727_v39 = vadd.f32 %v1726_v12, %v1725_v60  ;;  %v1640_v5 = vmul.f32 %v1436_v13, %v1436_v13  ;;  %v1730_v48 = vsel %vm65_vm0, %v1670_v1, 0.0 }
 0x3e9   :  { %v1728_v25 = vsel %vm65_vm0, %v1669_v52, 0.0  ;;  %v1639_v49 = vmul.f32 %v1435_v28, %v1435_v28 }
 0x3ea   :  { %v1729_v4 = vadd.f32 %v1728_v25, %v1727_v39  ;;  %v1672_v27 = vmul.f32 0.0, %v1640_v5  ;;  %v2105_v10 = vpop.f32.mrb[32].mxu1 }
 0x3eb   :  { %v1671_v7 = vmul.f32 0.0, %v1639_v49  ;;  %v2106_v61 = vpop.f32.mrb[33].mxu1 }
 0x3ec   :  { %v1731_v51 = vadd.f32 %v1730_v48, %v1729_v4  ;;  %v1734_v6 = vsel %vm65_vm0, %v1672_v27, 0.0  ;;  %v2107_v35 = vadd.f32 %v2106_v61, %v2105_v10 }
 0x3ed   :  { %v1732_v9 = vsel %vm65_vm0, %v1671_v7, 0.0 }
 0x3ee   :  { %v1733_v45 = vadd.f32 %v1732_v9, %v1731_v51  ;;  %1815 = vst [vmem:[%s3699_s4] sm:$0x1] %v2107_v35 }
 0x3f0   :  { %v1735_v11 = vadd.f32 %v1734_v6, %v1733_v45 }
 0x3f2   :  { %1736 = vadd.xlane.f32.xlu0 %v1735_v11 }
 0x47f   :  { %v1737_v42 = vpop.xlane.xlu0 %1736 }
 0x480   :  { %v1738_v22 = vrot.slane %v1737_v42, 4 }
 0x482   :  { %v1739_v19 = vadd.f32 %v1738_v22, %v1737_v42 }
 0x484   :  { %v1740_v3 = vrot.slane %v1739_v19, 2 }
 0x486   :  { %v1741_v46 = vadd.f32 %v1740_v3, %v1739_v19 }
 0x488   :  { %v1742_v31 = vrot.slane %v1741_v46, 1 }
 0x48a   :  { %v1743_v43 = vadd.f32 %v1742_v31, %v1741_v46 }
 0x48c   :  { %2380 = vpush %v1743_v43 }
 0x4bd   :  { %s2381_s6 = spop %2380 }
 0x4be   :  { %v1816_v41 = vstv %s2381_s6 }
 0x4bf   :  { %1817 = vst [vmem:[%s3700_s5] sm:$0x1] %v1816_v41 }

</bundles_post_ra>
